<compile_context>
chip_gen: v7x
topology: tpu7x:2x2x1
jax: 0.10.0
libtpu: 0.0.40
codegen_flags: <defaults>
</compile_context>

<pallas_src>
import functools
import math

import jax
import jax.numpy as jnp
import numpy as np
from jax.experimental import pallas as pl
from jax.experimental.pallas import tpu as pltpu

_HIGHEST = jax.lax.Precision.HIGHEST  # reference only


# --------------------------------------------------------------------------
# Host-side constants: separable interpolation matrices & conv border masks.
# --------------------------------------------------------------------------
def _interp_matrix(n_in: int, n_out: int) -> np.ndarray:
    """Row-interpolation matrix matching F.interpolate(..., align_corners=True)."""
    M = np.zeros((n_out, n_in), np.float32)
    if n_out == 1 or n_in == 1:
        M[:, 0] = 1.0
        return M
    scale = (n_in - 1) / (n_out - 1)
    for o in range(n_out):
        s = o * scale
        i0 = min(int(np.floor(s)), n_in - 1)
        i1 = min(i0 + 1, n_in - 1)
        w1 = s - i0
        M[o, i0] += 1.0 - w1
        M[o, i1] += w1
    return M


def _build_tap_masks_np(H: int, W: int) -> np.ndarray:
    """(9, H*W) 0/1 masks: tap (dy,dx) is valid where the shifted source pixel
    is inside the image (implements zero padding of a SAME 3x3 conv and also
    kills the lane-roll wraparound across row / image boundaries)."""
    L = H * W
    row = np.arange(L) // W
    col = np.arange(L) % W
    masks = np.ones((9, L), np.float32)
    t = 0
    for dy in (-1, 0, 1):
        for dx in (-1, 0, 1):
            ok = (row + dy >= 0) & (row + dy <= H - 1) & \
                 (col + dx >= 0) & (col + dx <= W - 1)
            masks[t] = ok.astype(np.float32)
            t += 1
    return masks


def _round_up(v: int, m: int) -> int:
    return (v + m - 1) // m * m


def _pad_axis(a, axis, new):
    if a.shape[axis] == new:
        return a
    pad = [(0, 0)] * a.ndim
    pad[axis] = (0, new - a.shape[axis])
    return jnp.pad(a, pad)


# --------------------------------------------------------------------------
# In-kernel 3x3 SAME conv: 9 per-tap MXU matmuls accumulated in f32.
# --------------------------------------------------------------------------
def _conv3x3_lanewise(x, w_ref, b_ref, masks, H, W, *,
                      residual=None, relu=True, compute_dtype):
    """3x3 SAME conv on a channel-major, spatially-flattened map.

    x:      (Cin, H*W) f32, spatial flattened row-major on the lane axis
    w_ref:  (9, Cout, Cin) ref, tap-major, already in compute_dtype
    b_ref:  (Cout, 1) f32 ref
    masks:  (9, H*W) f32 0/1 border masks (center tap all-ones, unused)
    """
    L = H * W
    Cin = x.shape[0]
    Cout = w_ref.shape[1]
    f32 = jnp.float32

    # Roll the smaller-channel side to minimize XLU (vector-extended) traffic.
    roll_outputs = Cout < Cin
    xc = x.astype(compute_dtype) if roll_outputs else None   # cast once

    acc = None
    t = 0
    for dy in (-1, 0, 1):
        for dx in (-1, 0, 1):
            shift = dy * W + dx
            wt = w_ref[t]                                     # (Cout, Cin)
            if roll_outputs:
                # matmul first, then rotate/mask the (smaller) output
                u = jnp.dot(wt, xc, preferred_element_type=f32)      # (Cout, L)
                if shift != 0:
                    u = pltpu.roll(u, (-shift) % L, axis=1)          # XLU
                    u = u * masks[t:t + 1, :]                        # VPU
            else:
                # rotate/mask the input tap, then matmul
                if shift != 0:
                    v = pltpu.roll(x, (-shift) % L, axis=1)          # XLU
                    v = v * masks[t:t + 1, :]                        # VPU
                else:
                    v = x
                u = jnp.dot(wt, v.astype(compute_dtype),
                            preferred_element_type=f32)              # (Cout, L)
            acc = u if acc is None else acc + u                      # f32 accum
            t += 1

    out = acc + b_ref[...].astype(f32)
    if residual is not None:
        out = out + residual
    if relu:
        out = jnp.maximum(out, 0.0)
    return out


# --------------------------------------------------------------------------
# Fused AIC1 + skip-add + AIC2 kernel (one grid step per batch element)
# --------------------------------------------------------------------------
def _refine_core_kernel(xr_ref, y_ref, mask_ref,
                        w11_ref, b11_ref, w12_ref, b12_ref,
                        w21_ref, b21_ref, w22_ref, b22_ref,
                        o_ref, *, H, W, compute_dtype):
    f32 = jnp.float32
    masks = mask_ref[...]                                     # (9, L) f32

    xr = xr_ref[0].astype(f32)                                # (Cp, L)
    y = y_ref[0].astype(f32)                                  # (Cp, L)

    conv = functools.partial(_conv3x3_lanewise, masks=masks, H=H, W=W,
                             compute_dtype=compute_dtype)

    # AIC 1:  h = relu(conv1(xr));  x1 = relu(conv2(h) + xr)
    h1 = conv(xr, w11_ref, b11_ref, relu=True)
    x1 = conv(h1, w12_ref, b12_ref, residual=xr, relu=True)

    # skip connection (fused; stays in VPU slots under the conv work)
    x1 = x1 + y

    # AIC 2
    h2 = conv(x1, w21_ref, b21_ref, relu=True)
    x2 = conv(h2, w22_ref, b22_ref, residual=x1, relu=True)

    o_ref[0] = x2.astype(o_ref.dtype)                         # (Cp, L) lane-dense


# --------------------------------------------------------------------------
# Wrapper: separable resize (XLA), layout plumbing, the single pallas_call.
# --------------------------------------------------------------------------
def _bilinear_resize_separable(x_nchw, H, W):
    """align_corners=True bilinear resize as two separable matmuls."""
    _, _, Hin, Win = x_nchw.shape
    Rh = jnp.asarray(_interp_matrix(Hin, H))                  # (H, Hin)
    Rw = jnp.asarray(_interp_matrix(Win, W))                  # (W, Win)
    t = jnp.einsum("nchw,pw->nchp", x_nchw, Rw)               # W interp
    return jnp.einsum("oh,nchp->ncop", Rh, t)                 # H interp


def _prep_w(w, co_p, ci_p, dtype):
    """(3,3,ci,co) HWIO -> (9, co_p, ci_p) tap-major, zero-padded, cast."""
    kh, kw, ci, co = w.shape
    w9 = jnp.transpose(w, (0, 1, 3, 2)).reshape(kh * kw, co, ci)
    w9 = _pad_axis(_pad_axis(w9, 1, co_p), 2, ci_p)
    return w9.astype(dtype)


def _prep_b(b, co_p):
    return _pad_axis(b, 0, co_p).reshape(co_p, 1).astype(jnp.float32)


def refine_forward(x_nchw, y_nchw, params, *, compute_dtype=jnp.bfloat16):
    N, Cin, Hin, Win = x_nchw.shape
    Ny, Cy, H, W = y_nchw.shape
    assert (Ny, Cy) == (N, Cin)
    L = H * W

    hidden = params["aic1"]["b1"].shape[0]
    Cp = _round_up(Cin, 8)       # dense sublane tiles / MXU rows
    Hp = _round_up(hidden, 8)

    # (1) separable bilinear resize (align_corners=True), computed by XLA and
    #     fed straight into the kernel.  O(C*H*W*(Hin+Win)) flops, KB-sized
    #     constants -- replaces the old O((H*W)^2) kron matrix.
    xr = _bilinear_resize_separable(x_nchw, H, W)             # (N, Cin, H, W)

    # (2) pad channels, flatten spatial dims onto the 128-lane axis
    xr_flat = _pad_axis(xr, 1, Cp).reshape(N, Cp, L)
    y_flat = _pad_axis(y_nchw, 1, Cp).reshape(N, Cp, L)

    mask9 = jnp.asarray(_build_tap_masks_np(H, W))            # (9, L) f32

    p1, p2 = params["aic1"], params["aic2"]
    w11, b11 = _prep_w(p1["w1"], Hp, Cp, compute_dtype), _prep_b(p1["b1"], Hp)
    w12, b12 = _prep_w(p1["w2"], Cp, Hp, compute_dtype), _prep_b(p1["b2"], Cp)
    w21, b21 = _prep_w(p2["w1"], Hp, Cp, compute_dtype), _prep_b(p2["b1"], Hp)
    w22, b22 = _prep_w(p2["w2"], Cp, Hp, compute_dtype), _prep_b(p2["b2"], Cp)

    def const_spec(a):
        # Constant operand (same block every grid step).
        # TODO(synk): pipeline_mode=pl.Buffered(1) on these once single
        # buffering of constants is verified; halves their VMEM on v7x.
        return pl.BlockSpec(a.shape, lambda n, _nd=a.ndim: (0,) * _nd)

    kern = functools.partial(_refine_core_kernel, H=H, W=W,
                             compute_dtype=compute_dtype)
    out = pl.pallas_call(
        kern,
        out_shape=jax.ShapeDtypeStruct((N, Cp, L), x_nchw.dtype),
        grid=(N,),
        in_specs=[
            pl.BlockSpec((1, Cp, L), lambda n: (n, 0, 0)),    # resized x
            pl.BlockSpec((1, Cp, L), lambda n: (n, 0, 0)),    # skip y
            const_spec(mask9),
            const_spec(w11), const_spec(b11), const_spec(w12), const_spec(b12),
            const_spec(w21), const_spec(b21), const_spec(w22), const_spec(b22),
        ],
        out_specs=pl.BlockSpec((1, Cp, L), lambda n: (n, 0, 0)),
        compiler_params=pltpu.CompilerParams(
            dimension_semantics=("parallel",)),
    )(xr_flat, y_flat, mask9, w11, b11, w12, b12, w21, b21, w22, b22)

    return out.reshape(N, Cp, H, W)[:, :Cin]


# --------------------------------------------------------------------------
# Parameter init (deterministic, Kaiming-uniform-ish like nn.Conv2d default)
# --------------------------------------------------------------------------
def init_aic(key, inputs, hidden):
    k1, k2, k3, k4 = jax.random.split(key, 4)
    s1 = 1.0 / math.sqrt(inputs * 9)
    s2 = 1.0 / math.sqrt(hidden * 9)
    return {
        "w1": jax.random.uniform(k1, (3, 3, inputs, hidden), jnp.float32, -s1, s1),
        "b1": jax.random.uniform(k2, (hidden,), jnp.float32, -s1, s1),
        "w2": jax.random.uniform(k3, (3, 3, hidden, inputs), jnp.float32, -s2, s2),
        "b2": jax.random.uniform(k4, (inputs,), jnp.float32, -s2, s2),
    }


# --------------------------------------------------------------------------
# Pure-JAX reference (f32 / HIGHEST; for correctness check only)
# --------------------------------------------------------------------------
def _conv3x3_ref(x, w, b):
    out = jax.lax.conv_general_dilated(
        x, w, (1, 1), "SAME",
        dimension_numbers=("NHWC", "HWIO", "NHWC"), precision=_HIGHEST)
    return out + b


def _aic_ref(x, p):
    h = jax.nn.relu(_conv3x3_ref(x, p["w1"], p["b1"]))
    return jax.nn.relu(_conv3x3_ref(h, p["w2"], p["b2"]) + x)


def refine_ref(x_nchw, y_nchw, params):
    Hout, Wout = y_nchw.shape[-2:]
    Hin, Win = x_nchw.shape[-2:]
    Rh = jnp.asarray(_interp_matrix(Hin, Hout))
    Rw = jnp.asarray(_interp_matrix(Win, Wout))
    xr = jnp.einsum("oh,nchw,pw->ncop", Rh, x_nchw, Rw, precision=_HIGHEST)
    x = jnp.transpose(xr, (0, 2, 3, 1))
    y = jnp.transpose(y_nchw, (0, 2, 3, 1))
    x = _aic_ref(x, params["aic1"])
    x = x + y
    x = _aic_ref(x, params["aic2"])
    return jnp.transpose(x, (0, 3, 1, 2))


# --------------------------------------------------------------------------
if __name__ == "__main__":
    # hidden != inputs so both per-tap paths (roll-inputs and roll-outputs
    # when Cout < Cin) are exercised.
    N, inputs, hidden = 2, 4, 16
    Hx, Wx = 8, 8          # low-res feature x
    Hy, Wy = 16, 16        # skip feature y (target size)

    key = jax.random.PRNGKey(0)
    kx, ky, k1, k2 = jax.random.split(key, 4)
    x = jax.random.normal(kx, (N, inputs, Hx, Wx), jnp.float32)
    y = jax.random.normal(ky, (N, inputs, Hy, Wy), jnp.float32)
    params = {"aic1": init_aic(k1, inputs, hidden),
              "aic2": init_aic(k2, inputs, hidden)}

    out = jax.block_until_ready(refine_forward(x, y, params))
    ref = jax.block_until_ready(refine_ref(x, y, params))

    assert out.shape == (N, inputs, Hy, Wy)
    # bf16 MXU operands with f32 accumulation vs. an f32/HIGHEST reference.
    np.testing.assert_allclose(np.asarray(out), np.asarray(ref),
                               rtol=5e-2, atol=5e-2)

    print("KERNEL_OK")
</pallas_src>

<mosaic_0001>
module attributes {stable_mosaic.version = 11 : i64} {
  func.func @_refine_core_kernel(%arg0: i32, %arg1: memref<1x8x256xf32, #tpu.memory_space<vmem>>, %arg2: memref<1x8x256xf32, #tpu.memory_space<vmem>>, %arg3: memref<9x256xf32, #tpu.memory_space<vmem>>, %arg4: memref<9x16x8xbf16, #tpu.memory_space<vmem>>, %arg5: memref<16x1xf32, #tpu.memory_space<vmem>>, %arg6: memref<9x8x16xbf16, #tpu.memory_space<vmem>>, %arg7: memref<8x1xf32, #tpu.memory_space<vmem>>, %arg8: memref<9x16x8xbf16, #tpu.memory_space<vmem>>, %arg9: memref<16x1xf32, #tpu.memory_space<vmem>>, %arg10: memref<9x8x16xbf16, #tpu.memory_space<vmem>>, %arg11: memref<8x1xf32, #tpu.memory_space<vmem>>, %arg12: memref<1x8x256xf32, #tpu.memory_space<vmem>>) attributes {dimension_semantics = [#tpu.dimension_semantics<parallel>], iteration_bounds = array<i64: 2>, scalar_prefetch = 0 : i64, scratch_operands = 0 : i64, tpu.core_type = #tpu.core_type<tc>, window_params = [{transform_indices = @transform_0, window_bounds = array<i64: 1, 8, 256>}, {transform_indices = @transform_1, window_bounds = array<i64: 1, 8, 256>}, {pipeline_mode = #tpu.pipeline_mode<synchronous>, transform_indices = @transform_2, window_bounds = array<i64: 9, 256>}, {pipeline_mode = #tpu.pipeline_mode<synchronous>, transform_indices = @transform_3, window_bounds = array<i64: 9, 16, 8>}, {pipeline_mode = #tpu.pipeline_mode<synchronous>, transform_indices = @transform_4, window_bounds = array<i64: 16, 1>}, {pipeline_mode = #tpu.pipeline_mode<synchronous>, transform_indices = @transform_5, window_bounds = array<i64: 9, 8, 16>}, {pipeline_mode = #tpu.pipeline_mode<synchronous>, transform_indices = @transform_6, window_bounds = array<i64: 8, 1>}, {pipeline_mode = #tpu.pipeline_mode<synchronous>, transform_indices = @transform_7, window_bounds = array<i64: 9, 16, 8>}, {pipeline_mode = #tpu.pipeline_mode<synchronous>, transform_indices = @transform_8, window_bounds = array<i64: 16, 1>}, {pipeline_mode = #tpu.pipeline_mode<synchronous>, transform_indices = @transform_9, window_bounds = array<i64: 9, 8, 16>}, {pipeline_mode = #tpu.pipeline_mode<synchronous>, transform_indices = @transform_10, window_bounds = array<i64: 8, 1>}, {transform_indices = @transform_11, window_bounds = array<i64: 1, 8, 256>}]} {
    %c0 = arith.constant 0 : index
    %c0_0 = arith.constant 0 : index
    %0 = vector.load %arg3[%c0, %c0_0] : memref<9x256xf32, #tpu.memory_space<vmem>>, vector<9x256xf32>
    %c0_1 = arith.constant 0 : index
    %c0_2 = arith.constant 0 : index
    %c0_3 = arith.constant 0 : index
    %1 = vector.load %arg1[%c0_1, %c0_2, %c0_3] : memref<1x8x256xf32, #tpu.memory_space<vmem>>, vector<1x8x256xf32>
    %2 = vector.shape_cast %1 : vector<1x8x256xf32> to vector<8x256xf32>
    %c0_4 = arith.constant 0 : index
    %c0_5 = arith.constant 0 : index
    %c0_6 = arith.constant 0 : index
    %3 = vector.load %arg2[%c0_4, %c0_5, %c0_6] : memref<1x8x256xf32, #tpu.memory_space<vmem>>, vector<1x8x256xf32>
    %4 = vector.shape_cast %3 : vector<1x8x256xf32> to vector<8x256xf32>
    %c0_7 = arith.constant 0 : index
    %c0_8 = arith.constant 0 : index
    %c0_9 = arith.constant 0 : index
    %5 = vector.load %arg4[%c0_7, %c0_8, %c0_9] : memref<9x16x8xbf16, #tpu.memory_space<vmem>>, vector<1x16x8xbf16>
    %6 = vector.shape_cast %5 : vector<1x16x8xbf16> to vector<16x8xbf16>
    %c17_i32 = arith.constant 17 : i32
    %7 = tpu.dynamic_rotate %2 by %c17_i32 dim 1 : vector<8x256xf32>, i32 -> vector<8x256xf32>
    %8 = vector.extract_strided_slice %0 {offsets = [0, 0], sizes = [1, 256], strides = [1, 1]} : vector<9x256xf32> to vector<1x256xf32>
    %9 = vector.broadcast %8 : vector<1x256xf32> to vector<8x256xf32>
    %10 = arith.mulf %7, %9 : vector<8x256xf32>
    %11 = arith.truncf %10 : vector<8x256xf32> to vector<8x256xbf16>
    %cst = arith.constant dense<0.000000e+00> : vector<16x256xf32>
    %12 = tpu.matmul %6, %11, %cst {dimension_numbers = #tpu.dot_dimension_numbers<[1], [0], [0], [1], [0, 0, 1, 1], [], []>} : vector<16x8xbf16>, vector<8x256xbf16>, vector<16x256xf32> -> vector<16x256xf32>
    %c1 = arith.constant 1 : index
    %c0_10 = arith.constant 0 : index
    %c0_11 = arith.constant 0 : index
    %13 = vector.load %arg4[%c1, %c0_10, %c0_11] : memref<9x16x8xbf16, #tpu.memory_space<vmem>>, vector<1x16x8xbf16>
    %14 = vector.shape_cast %13 : vector<1x16x8xbf16> to vector<16x8xbf16>
    %c16_i32 = arith.constant 16 : i32
    %15 = tpu.dynamic_rotate %2 by %c16_i32 dim 1 : vector<8x256xf32>, i32 -> vector<8x256xf32>
    %16 = vector.extract_strided_slice %0 {offsets = [1, 0], sizes = [1, 256], strides = [1, 1]} : vector<9x256xf32> to vector<1x256xf32>
    %17 = vector.broadcast %16 : vector<1x256xf32> to vector<8x256xf32>
    %18 = arith.mulf %15, %17 : vector<8x256xf32>
    %19 = arith.truncf %18 : vector<8x256xf32> to vector<8x256xbf16>
    %cst_12 = arith.constant dense<0.000000e+00> : vector<16x256xf32>
    %20 = tpu.matmul %14, %19, %cst_12 {dimension_numbers = #tpu.dot_dimension_numbers<[1], [0], [0], [1], [0, 0, 1, 1], [], []>} : vector<16x8xbf16>, vector<8x256xbf16>, vector<16x256xf32> -> vector<16x256xf32>
    %21 = arith.addf %12, %20 : vector<16x256xf32>
    %c2 = arith.constant 2 : index
    %c0_13 = arith.constant 0 : index
    %c0_14 = arith.constant 0 : index
    %22 = vector.load %arg4[%c2, %c0_13, %c0_14] : memref<9x16x8xbf16, #tpu.memory_space<vmem>>, vector<1x16x8xbf16>
    %23 = vector.shape_cast %22 : vector<1x16x8xbf16> to vector<16x8xbf16>
    %c15_i32 = arith.constant 15 : i32
    %24 = tpu.dynamic_rotate %2 by %c15_i32 dim 1 : vector<8x256xf32>, i32 -> vector<8x256xf32>
    %25 = vector.extract_strided_slice %0 {offsets = [2, 0], sizes = [1, 256], strides = [1, 1]} : vector<9x256xf32> to vector<1x256xf32>
    %26 = vector.broadcast %25 : vector<1x256xf32> to vector<8x256xf32>
    %27 = arith.mulf %24, %26 : vector<8x256xf32>
    %28 = arith.truncf %27 : vector<8x256xf32> to vector<8x256xbf16>
    %cst_15 = arith.constant dense<0.000000e+00> : vector<16x256xf32>
    %29 = tpu.matmul %23, %28, %cst_15 {dimension_numbers = #tpu.dot_dimension_numbers<[1], [0], [0], [1], [0, 0, 1, 1], [], []>} : vector<16x8xbf16>, vector<8x256xbf16>, vector<16x256xf32> -> vector<16x256xf32>
    %30 = arith.addf %21, %29 : vector<16x256xf32>
    %c3 = arith.constant 3 : index
    %c0_16 = arith.constant 0 : index
    %c0_17 = arith.constant 0 : index
    %31 = vector.load %arg4[%c3, %c0_16, %c0_17] : memref<9x16x8xbf16, #tpu.memory_space<vmem>>, vector<1x16x8xbf16>
    %32 = vector.shape_cast %31 : vector<1x16x8xbf16> to vector<16x8xbf16>
    %c1_i32 = arith.constant 1 : i32
    %33 = tpu.dynamic_rotate %2 by %c1_i32 dim 1 : vector<8x256xf32>, i32 -> vector<8x256xf32>
    %34 = vector.extract_strided_slice %0 {offsets = [3, 0], sizes = [1, 256], strides = [1, 1]} : vector<9x256xf32> to vector<1x256xf32>
    %35 = vector.broadcast %34 : vector<1x256xf32> to vector<8x256xf32>
    %36 = arith.mulf %33, %35 : vector<8x256xf32>
    %37 = arith.truncf %36 : vector<8x256xf32> to vector<8x256xbf16>
    %cst_18 = arith.constant dense<0.000000e+00> : vector<16x256xf32>
    %38 = tpu.matmul %32, %37, %cst_18 {dimension_numbers = #tpu.dot_dimension_numbers<[1], [0], [0], [1], [0, 0, 1, 1], [], []>} : vector<16x8xbf16>, vector<8x256xbf16>, vector<16x256xf32> -> vector<16x256xf32>
    %39 = arith.addf %30, %38 : vector<16x256xf32>
    %c4 = arith.constant 4 : index
    %c0_19 = arith.constant 0 : index
    %c0_20 = arith.constant 0 : index
    %40 = vector.load %arg4[%c4, %c0_19, %c0_20] : memref<9x16x8xbf16, #tpu.memory_space<vmem>>, vector<1x16x8xbf16>
    %41 = vector.shape_cast %40 : vector<1x16x8xbf16> to vector<16x8xbf16>
    %42 = arith.truncf %2 : vector<8x256xf32> to vector<8x256xbf16>
    %cst_21 = arith.constant dense<0.000000e+00> : vector<16x256xf32>
    %43 = tpu.matmul %41, %42, %cst_21 {dimension_numbers = #tpu.dot_dimension_numbers<[1], [0], [0], [1], [0, 0, 1, 1], [], []>} : vector<16x8xbf16>, vector<8x256xbf16>, vector<16x256xf32> -> vector<16x256xf32>
    %44 = arith.addf %39, %43 : vector<16x256xf32>
    %c5 = arith.constant 5 : index
    %c0_22 = arith.constant 0 : index
    %c0_23 = arith.constant 0 : index
    %45 = vector.load %arg4[%c5, %c0_22, %c0_23] : memref<9x16x8xbf16, #tpu.memory_space<vmem>>, vector<1x16x8xbf16>
    %46 = vector.shape_cast %45 : vector<1x16x8xbf16> to vector<16x8xbf16>
    %c255_i32 = arith.constant 255 : i32
    %47 = tpu.dynamic_rotate %2 by %c255_i32 dim 1 : vector<8x256xf32>, i32 -> vector<8x256xf32>
    %48 = vector.extract_strided_slice %0 {offsets = [5, 0], sizes = [1, 256], strides = [1, 1]} : vector<9x256xf32> to vector<1x256xf32>
    %49 = vector.broadcast %48 : vector<1x256xf32> to vector<8x256xf32>
    %50 = arith.mulf %47, %49 : vector<8x256xf32>
    %51 = arith.truncf %50 : vector<8x256xf32> to vector<8x256xbf16>
    %cst_24 = arith.constant dense<0.000000e+00> : vector<16x256xf32>
    %52 = tpu.matmul %46, %51, %cst_24 {dimension_numbers = #tpu.dot_dimension_numbers<[1], [0], [0], [1], [0, 0, 1, 1], [], []>} : vector<16x8xbf16>, vector<8x256xbf16>, vector<16x256xf32> -> vector<16x256xf32>
    %53 = arith.addf %44, %52 : vector<16x256xf32>
    %c6 = arith.constant 6 : index
    %c0_25 = arith.constant 0 : index
    %c0_26 = arith.constant 0 : index
    %54 = vector.load %arg4[%c6, %c0_25, %c0_26] : memref<9x16x8xbf16, #tpu.memory_space<vmem>>, vector<1x16x8xbf16>
    %55 = vector.shape_cast %54 : vector<1x16x8xbf16> to vector<16x8xbf16>
    %c241_i32 = arith.constant 241 : i32
    %56 = tpu.dynamic_rotate %2 by %c241_i32 dim 1 : vector<8x256xf32>, i32 -> vector<8x256xf32>
    %57 = vector.extract_strided_slice %0 {offsets = [6, 0], sizes = [1, 256], strides = [1, 1]} : vector<9x256xf32> to vector<1x256xf32>
    %58 = vector.broadcast %57 : vector<1x256xf32> to vector<8x256xf32>
    %59 = arith.mulf %56, %58 : vector<8x256xf32>
    %60 = arith.truncf %59 : vector<8x256xf32> to vector<8x256xbf16>
    %cst_27 = arith.constant dense<0.000000e+00> : vector<16x256xf32>
    %61 = tpu.matmul %55, %60, %cst_27 {dimension_numbers = #tpu.dot_dimension_numbers<[1], [0], [0], [1], [0, 0, 1, 1], [], []>} : vector<16x8xbf16>, vector<8x256xbf16>, vector<16x256xf32> -> vector<16x256xf32>
    %62 = arith.addf %53, %61 : vector<16x256xf32>
    %c7 = arith.constant 7 : index
    %c0_28 = arith.constant 0 : index
    %c0_29 = arith.constant 0 : index
    %63 = vector.load %arg4[%c7, %c0_28, %c0_29] : memref<9x16x8xbf16, #tpu.memory_space<vmem>>, vector<1x16x8xbf16>
    %64 = vector.shape_cast %63 : vector<1x16x8xbf16> to vector<16x8xbf16>
    %c240_i32 = arith.constant 240 : i32
    %65 = tpu.dynamic_rotate %2 by %c240_i32 dim 1 : vector<8x256xf32>, i32 -> vector<8x256xf32>
    %66 = vector.extract_strided_slice %0 {offsets = [7, 0], sizes = [1, 256], strides = [1, 1]} : vector<9x256xf32> to vector<1x256xf32>
    %67 = vector.broadcast %66 : vector<1x256xf32> to vector<8x256xf32>
    %68 = arith.mulf %65, %67 : vector<8x256xf32>
    %69 = arith.truncf %68 : vector<8x256xf32> to vector<8x256xbf16>
    %cst_30 = arith.constant dense<0.000000e+00> : vector<16x256xf32>
    %70 = tpu.matmul %64, %69, %cst_30 {dimension_numbers = #tpu.dot_dimension_numbers<[1], [0], [0], [1], [0, 0, 1, 1], [], []>} : vector<16x8xbf16>, vector<8x256xbf16>, vector<16x256xf32> -> vector<16x256xf32>
    %71 = arith.addf %62, %70 : vector<16x256xf32>
    %c8 = arith.constant 8 : index
    %c0_31 = arith.constant 0 : index
    %c0_32 = arith.constant 0 : index
    %72 = vector.load %arg4[%c8, %c0_31, %c0_32] : memref<9x16x8xbf16, #tpu.memory_space<vmem>>, vector<1x16x8xbf16>
    %73 = vector.shape_cast %72 : vector<1x16x8xbf16> to vector<16x8xbf16>
    %c239_i32 = arith.constant 239 : i32
    %74 = tpu.dynamic_rotate %2 by %c239_i32 dim 1 : vector<8x256xf32>, i32 -> vector<8x256xf32>
    %75 = vector.extract_strided_slice %0 {offsets = [8, 0], sizes = [1, 256], strides = [1, 1]} : vector<9x256xf32> to vector<1x256xf32>
    %76 = vector.broadcast %75 : vector<1x256xf32> to vector<8x256xf32>
    %77 = arith.mulf %74, %76 : vector<8x256xf32>
    %78 = arith.truncf %77 : vector<8x256xf32> to vector<8x256xbf16>
    %cst_33 = arith.constant dense<0.000000e+00> : vector<16x256xf32>
    %79 = tpu.matmul %73, %78, %cst_33 {dimension_numbers = #tpu.dot_dimension_numbers<[1], [0], [0], [1], [0, 0, 1, 1], [], []>} : vector<16x8xbf16>, vector<8x256xbf16>, vector<16x256xf32> -> vector<16x256xf32>
    %80 = arith.addf %71, %79 : vector<16x256xf32>
    %c0_34 = arith.constant 0 : index
    %c0_35 = arith.constant 0 : index
    %81 = vector.load %arg5[%c0_34, %c0_35] : memref<16x1xf32, #tpu.memory_space<vmem>>, vector<16x1xf32>
    %82 = vector.broadcast %81 : vector<16x1xf32> to vector<16x256xf32>
    %83 = arith.addf %80, %82 : vector<16x256xf32>
    %cst_36 = arith.constant 0.000000e+00 : f32
    %84 = vector.broadcast %cst_36 : f32 to vector<16x256xf32>
    %85 = arith.maximumf %83, %84 : vector<16x256xf32>
    %86 = arith.truncf %85 : vector<16x256xf32> to vector<16x256xbf16>
    %c0_37 = arith.constant 0 : index
    %c0_38 = arith.constant 0 : index
    %c0_39 = arith.constant 0 : index
    %87 = vector.load %arg6[%c0_37, %c0_38, %c0_39] : memref<9x8x16xbf16, #tpu.memory_space<vmem>>, vector<1x8x16xbf16>
    %88 = vector.shape_cast %87 : vector<1x8x16xbf16> to vector<8x16xbf16>
    %cst_40 = arith.constant dense<0.000000e+00> : vector<8x256xf32>
    %89 = tpu.matmul %88, %86, %cst_40 {dimension_numbers = #tpu.dot_dimension_numbers<[1], [0], [0], [1], [0, 0, 1, 1], [], []>} : vector<8x16xbf16>, vector<16x256xbf16>, vector<8x256xf32> -> vector<8x256xf32>
    %c17_i32_41 = arith.constant 17 : i32
    %90 = tpu.dynamic_rotate %89 by %c17_i32_41 dim 1 : vector<8x256xf32>, i32 -> vector<8x256xf32>
    %91 = vector.extract_strided_slice %0 {offsets = [0, 0], sizes = [1, 256], strides = [1, 1]} : vector<9x256xf32> to vector<1x256xf32>
    %92 = vector.broadcast %91 : vector<1x256xf32> to vector<8x256xf32>
    %93 = arith.mulf %90, %92 : vector<8x256xf32>
    %c1_42 = arith.constant 1 : index
    %c0_43 = arith.constant 0 : index
    %c0_44 = arith.constant 0 : index
    %94 = vector.load %arg6[%c1_42, %c0_43, %c0_44] : memref<9x8x16xbf16, #tpu.memory_space<vmem>>, vector<1x8x16xbf16>
    %95 = vector.shape_cast %94 : vector<1x8x16xbf16> to vector<8x16xbf16>
    %cst_45 = arith.constant dense<0.000000e+00> : vector<8x256xf32>
    %96 = tpu.matmul %95, %86, %cst_45 {dimension_numbers = #tpu.dot_dimension_numbers<[1], [0], [0], [1], [0, 0, 1, 1], [], []>} : vector<8x16xbf16>, vector<16x256xbf16>, vector<8x256xf32> -> vector<8x256xf32>
    %c16_i32_46 = arith.constant 16 : i32
    %97 = tpu.dynamic_rotate %96 by %c16_i32_46 dim 1 : vector<8x256xf32>, i32 -> vector<8x256xf32>
    %98 = vector.extract_strided_slice %0 {offsets = [1, 0], sizes = [1, 256], strides = [1, 1]} : vector<9x256xf32> to vector<1x256xf32>
    %99 = vector.broadcast %98 : vector<1x256xf32> to vector<8x256xf32>
    %100 = arith.mulf %97, %99 : vector<8x256xf32>
    %101 = arith.addf %93, %100 : vector<8x256xf32>
    %c2_47 = arith.constant 2 : index
    %c0_48 = arith.constant 0 : index
    %c0_49 = arith.constant 0 : index
    %102 = vector.load %arg6[%c2_47, %c0_48, %c0_49] : memref<9x8x16xbf16, #tpu.memory_space<vmem>>, vector<1x8x16xbf16>
    %103 = vector.shape_cast %102 : vector<1x8x16xbf16> to vector<8x16xbf16>
    %cst_50 = arith.constant dense<0.000000e+00> : vector<8x256xf32>
    %104 = tpu.matmul %103, %86, %cst_50 {dimension_numbers = #tpu.dot_dimension_numbers<[1], [0], [0], [1], [0, 0, 1, 1], [], []>} : vector<8x16xbf16>, vector<16x256xbf16>, vector<8x256xf32> -> vector<8x256xf32>
    %c15_i32_51 = arith.constant 15 : i32
    %105 = tpu.dynamic_rotate %104 by %c15_i32_51 dim 1 : vector<8x256xf32>, i32 -> vector<8x256xf32>
    %106 = vector.extract_strided_slice %0 {offsets = [2, 0], sizes = [1, 256], strides = [1, 1]} : vector<9x256xf32> to vector<1x256xf32>
    %107 = vector.broadcast %106 : vector<1x256xf32> to vector<8x256xf32>
    %108 = arith.mulf %105, %107 : vector<8x256xf32>
    %109 = arith.addf %101, %108 : vector<8x256xf32>
    %c3_52 = arith.constant 3 : index
    %c0_53 = arith.constant 0 : index
    %c0_54 = arith.constant 0 : index
    %110 = vector.load %arg6[%c3_52, %c0_53, %c0_54] : memref<9x8x16xbf16, #tpu.memory_space<vmem>>, vector<1x8x16xbf16>
    %111 = vector.shape_cast %110 : vector<1x8x16xbf16> to vector<8x16xbf16>
    %cst_55 = arith.constant dense<0.000000e+00> : vector<8x256xf32>
    %112 = tpu.matmul %111, %86, %cst_55 {dimension_numbers = #tpu.dot_dimension_numbers<[1], [0], [0], [1], [0, 0, 1, 1], [], []>} : vector<8x16xbf16>, vector<16x256xbf16>, vector<8x256xf32> -> vector<8x256xf32>
    %c1_i32_56 = arith.constant 1 : i32
    %113 = tpu.dynamic_rotate %112 by %c1_i32_56 dim 1 : vector<8x256xf32>, i32 -> vector<8x256xf32>
    %114 = vector.extract_strided_slice %0 {offsets = [3, 0], sizes = [1, 256], strides = [1, 1]} : vector<9x256xf32> to vector<1x256xf32>
    %115 = vector.broadcast %114 : vector<1x256xf32> to vector<8x256xf32>
    %116 = arith.mulf %113, %115 : vector<8x256xf32>
    %117 = arith.addf %109, %116 : vector<8x256xf32>
    %c4_57 = arith.constant 4 : index
    %c0_58 = arith.constant 0 : index
    %c0_59 = arith.constant 0 : index
    %118 = vector.load %arg6[%c4_57, %c0_58, %c0_59] : memref<9x8x16xbf16, #tpu.memory_space<vmem>>, vector<1x8x16xbf16>
    %119 = vector.shape_cast %118 : vector<1x8x16xbf16> to vector<8x16xbf16>
    %cst_60 = arith.constant dense<0.000000e+00> : vector<8x256xf32>
    %120 = tpu.matmul %119, %86, %cst_60 {dimension_numbers = #tpu.dot_dimension_numbers<[1], [0], [0], [1], [0, 0, 1, 1], [], []>} : vector<8x16xbf16>, vector<16x256xbf16>, vector<8x256xf32> -> vector<8x256xf32>
    %121 = arith.addf %117, %120 : vector<8x256xf32>
    %c5_61 = arith.constant 5 : index
    %c0_62 = arith.constant 0 : index
    %c0_63 = arith.constant 0 : index
    %122 = vector.load %arg6[%c5_61, %c0_62, %c0_63] : memref<9x8x16xbf16, #tpu.memory_space<vmem>>, vector<1x8x16xbf16>
    %123 = vector.shape_cast %122 : vector<1x8x16xbf16> to vector<8x16xbf16>
    %cst_64 = arith.constant dense<0.000000e+00> : vector<8x256xf32>
    %124 = tpu.matmul %123, %86, %cst_64 {dimension_numbers = #tpu.dot_dimension_numbers<[1], [0], [0], [1], [0, 0, 1, 1], [], []>} : vector<8x16xbf16>, vector<16x256xbf16>, vector<8x256xf32> -> vector<8x256xf32>
    %c255_i32_65 = arith.constant 255 : i32
    %125 = tpu.dynamic_rotate %124 by %c255_i32_65 dim 1 : vector<8x256xf32>, i32 -> vector<8x256xf32>
    %126 = vector.extract_strided_slice %0 {offsets = [5, 0], sizes = [1, 256], strides = [1, 1]} : vector<9x256xf32> to vector<1x256xf32>
    %127 = vector.broadcast %126 : vector<1x256xf32> to vector<8x256xf32>
    %128 = arith.mulf %125, %127 : vector<8x256xf32>
    %129 = arith.addf %121, %128 : vector<8x256xf32>
    %c6_66 = arith.constant 6 : index
    %c0_67 = arith.constant 0 : index
    %c0_68 = arith.constant 0 : index
    %130 = vector.load %arg6[%c6_66, %c0_67, %c0_68] : memref<9x8x16xbf16, #tpu.memory_space<vmem>>, vector<1x8x16xbf16>
    %131 = vector.shape_cast %130 : vector<1x8x16xbf16> to vector<8x16xbf16>
    %cst_69 = arith.constant dense<0.000000e+00> : vector<8x256xf32>
    %132 = tpu.matmul %131, %86, %cst_69 {dimension_numbers = #tpu.dot_dimension_numbers<[1], [0], [0], [1], [0, 0, 1, 1], [], []>} : vector<8x16xbf16>, vector<16x256xbf16>, vector<8x256xf32> -> vector<8x256xf32>
    %c241_i32_70 = arith.constant 241 : i32
    %133 = tpu.dynamic_rotate %132 by %c241_i32_70 dim 1 : vector<8x256xf32>, i32 -> vector<8x256xf32>
    %134 = vector.extract_strided_slice %0 {offsets = [6, 0], sizes = [1, 256], strides = [1, 1]} : vector<9x256xf32> to vector<1x256xf32>
    %135 = vector.broadcast %134 : vector<1x256xf32> to vector<8x256xf32>
    %136 = arith.mulf %133, %135 : vector<8x256xf32>
    %137 = arith.addf %129, %136 : vector<8x256xf32>
    %c7_71 = arith.constant 7 : index
    %c0_72 = arith.constant 0 : index
    %c0_73 = arith.constant 0 : index
    %138 = vector.load %arg6[%c7_71, %c0_72, %c0_73] : memref<9x8x16xbf16, #tpu.memory_space<vmem>>, vector<1x8x16xbf16>
    %139 = vector.shape_cast %138 : vector<1x8x16xbf16> to vector<8x16xbf16>
    %cst_74 = arith.constant dense<0.000000e+00> : vector<8x256xf32>
    %140 = tpu.matmul %139, %86, %cst_74 {dimension_numbers = #tpu.dot_dimension_numbers<[1], [0], [0], [1], [0, 0, 1, 1], [], []>} : vector<8x16xbf16>, vector<16x256xbf16>, vector<8x256xf32> -> vector<8x256xf32>
    %c240_i32_75 = arith.constant 240 : i32
    %141 = tpu.dynamic_rotate %140 by %c240_i32_75 dim 1 : vector<8x256xf32>, i32 -> vector<8x256xf32>
    %142 = vector.extract_strided_slice %0 {offsets = [7, 0], sizes = [1, 256], strides = [1, 1]} : vector<9x256xf32> to vector<1x256xf32>
    %143 = vector.broadcast %142 : vector<1x256xf32> to vector<8x256xf32>
    %144 = arith.mulf %141, %143 : vector<8x256xf32>
    %145 = arith.addf %137, %144 : vector<8x256xf32>
    %c8_76 = arith.constant 8 : index
    %c0_77 = arith.constant 0 : index
    %c0_78 = arith.constant 0 : index
    %146 = vector.load %arg6[%c8_76, %c0_77, %c0_78] : memref<9x8x16xbf16, #tpu.memory_space<vmem>>, vector<1x8x16xbf16>
    %147 = vector.shape_cast %146 : vector<1x8x16xbf16> to vector<8x16xbf16>
    %cst_79 = arith.constant dense<0.000000e+00> : vector<8x256xf32>
    %148 = tpu.matmul %147, %86, %cst_79 {dimension_numbers = #tpu.dot_dimension_numbers<[1], [0], [0], [1], [0, 0, 1, 1], [], []>} : vector<8x16xbf16>, vector<16x256xbf16>, vector<8x256xf32> -> vector<8x256xf32>
    %c239_i32_80 = arith.constant 239 : i32
    %149 = tpu.dynamic_rotate %148 by %c239_i32_80 dim 1 : vector<8x256xf32>, i32 -> vector<8x256xf32>
    %150 = vector.extract_strided_slice %0 {offsets = [8, 0], sizes = [1, 256], strides = [1, 1]} : vector<9x256xf32> to vector<1x256xf32>
    %151 = vector.broadcast %150 : vector<1x256xf32> to vector<8x256xf32>
    %152 = arith.mulf %149, %151 : vector<8x256xf32>
    %153 = arith.addf %145, %152 : vector<8x256xf32>
    %c0_81 = arith.constant 0 : index
    %c0_82 = arith.constant 0 : index
    %154 = vector.load %arg7[%c0_81, %c0_82] : memref<8x1xf32, #tpu.memory_space<vmem>>, vector<8x1xf32>
    %155 = vector.broadcast %154 : vector<8x1xf32> to vector<8x256xf32>
    %156 = arith.addf %153, %155 : vector<8x256xf32>
    %157 = arith.addf %156, %2 : vector<8x256xf32>
    %cst_83 = arith.constant 0.000000e+00 : f32
    %158 = vector.broadcast %cst_83 : f32 to vector<8x256xf32>
    %159 = arith.maximumf %157, %158 : vector<8x256xf32>
    %160 = arith.addf %159, %4 : vector<8x256xf32>
    %c0_84 = arith.constant 0 : index
    %c0_85 = arith.constant 0 : index
    %c0_86 = arith.constant 0 : index
    %161 = vector.load %arg8[%c0_84, %c0_85, %c0_86] : memref<9x16x8xbf16, #tpu.memory_space<vmem>>, vector<1x16x8xbf16>
    %162 = vector.shape_cast %161 : vector<1x16x8xbf16> to vector<16x8xbf16>
    %c17_i32_87 = arith.constant 17 : i32
    %163 = tpu.dynamic_rotate %160 by %c17_i32_87 dim 1 : vector<8x256xf32>, i32 -> vector<8x256xf32>
    %164 = vector.extract_strided_slice %0 {offsets = [0, 0], sizes = [1, 256], strides = [1, 1]} : vector<9x256xf32> to vector<1x256xf32>
    %165 = vector.broadcast %164 : vector<1x256xf32> to vector<8x256xf32>
    %166 = arith.mulf %163, %165 : vector<8x256xf32>
    %167 = arith.truncf %166 : vector<8x256xf32> to vector<8x256xbf16>
    %cst_88 = arith.constant dense<0.000000e+00> : vector<16x256xf32>
    %168 = tpu.matmul %162, %167, %cst_88 {dimension_numbers = #tpu.dot_dimension_numbers<[1], [0], [0], [1], [0, 0, 1, 1], [], []>} : vector<16x8xbf16>, vector<8x256xbf16>, vector<16x256xf32> -> vector<16x256xf32>
    %c1_89 = arith.constant 1 : index
    %c0_90 = arith.constant 0 : index
    %c0_91 = arith.constant 0 : index
    %169 = vector.load %arg8[%c1_89, %c0_90, %c0_91] : memref<9x16x8xbf16, #tpu.memory_space<vmem>>, vector<1x16x8xbf16>
    %170 = vector.shape_cast %169 : vector<1x16x8xbf16> to vector<16x8xbf16>
    %c16_i32_92 = arith.constant 16 : i32
    %171 = tpu.dynamic_rotate %160 by %c16_i32_92 dim 1 : vector<8x256xf32>, i32 -> vector<8x256xf32>
    %172 = vector.extract_strided_slice %0 {offsets = [1, 0], sizes = [1, 256], strides = [1, 1]} : vector<9x256xf32> to vector<1x256xf32>
    %173 = vector.broadcast %172 : vector<1x256xf32> to vector<8x256xf32>
    %174 = arith.mulf %171, %173 : vector<8x256xf32>
    %175 = arith.truncf %174 : vector<8x256xf32> to vector<8x256xbf16>
    %cst_93 = arith.constant dense<0.000000e+00> : vector<16x256xf32>
    %176 = tpu.matmul %170, %175, %cst_93 {dimension_numbers = #tpu.dot_dimension_numbers<[1], [0], [0], [1], [0, 0, 1, 1], [], []>} : vector<16x8xbf16>, vector<8x256xbf16>, vector<16x256xf32> -> vector<16x256xf32>
    %177 = arith.addf %168, %176 : vector<16x256xf32>
    %c2_94 = arith.constant 2 : index
    %c0_95 = arith.constant 0 : index
    %c0_96 = arith.constant 0 : index
    %178 = vector.load %arg8[%c2_94, %c0_95, %c0_96] : memref<9x16x8xbf16, #tpu.memory_space<vmem>>, vector<1x16x8xbf16>
    %179 = vector.shape_cast %178 : vector<1x16x8xbf16> to vector<16x8xbf16>
    %c15_i32_97 = arith.constant 15 : i32
    %180 = tpu.dynamic_rotate %160 by %c15_i32_97 dim 1 : vector<8x256xf32>, i32 -> vector<8x256xf32>
    %181 = vector.extract_strided_slice %0 {offsets = [2, 0], sizes = [1, 256], strides = [1, 1]} : vector<9x256xf32> to vector<1x256xf32>
    %182 = vector.broadcast %181 : vector<1x256xf32> to vector<8x256xf32>
    %183 = arith.mulf %180, %182 : vector<8x256xf32>
    %184 = arith.truncf %183 : vector<8x256xf32> to vector<8x256xbf16>
    %cst_98 = arith.constant dense<0.000000e+00> : vector<16x256xf32>
    %185 = tpu.matmul %179, %184, %cst_98 {dimension_numbers = #tpu.dot_dimension_numbers<[1], [0], [0], [1], [0, 0, 1, 1], [], []>} : vector<16x8xbf16>, vector<8x256xbf16>, vector<16x256xf32> -> vector<16x256xf32>
    %186 = arith.addf %177, %185 : vector<16x256xf32>
    %c3_99 = arith.constant 3 : index
    %c0_100 = arith.constant 0 : index
    %c0_101 = arith.constant 0 : index
    %187 = vector.load %arg8[%c3_99, %c0_100, %c0_101] : memref<9x16x8xbf16, #tpu.memory_space<vmem>>, vector<1x16x8xbf16>
    %188 = vector.shape_cast %187 : vector<1x16x8xbf16> to vector<16x8xbf16>
    %c1_i32_102 = arith.constant 1 : i32
    %189 = tpu.dynamic_rotate %160 by %c1_i32_102 dim 1 : vector<8x256xf32>, i32 -> vector<8x256xf32>
    %190 = vector.extract_strided_slice %0 {offsets = [3, 0], sizes = [1, 256], strides = [1, 1]} : vector<9x256xf32> to vector<1x256xf32>
    %191 = vector.broadcast %190 : vector<1x256xf32> to vector<8x256xf32>
    %192 = arith.mulf %189, %191 : vector<8x256xf32>
    %193 = arith.truncf %192 : vector<8x256xf32> to vector<8x256xbf16>
    %cst_103 = arith.constant dense<0.000000e+00> : vector<16x256xf32>
    %194 = tpu.matmul %188, %193, %cst_103 {dimension_numbers = #tpu.dot_dimension_numbers<[1], [0], [0], [1], [0, 0, 1, 1], [], []>} : vector<16x8xbf16>, vector<8x256xbf16>, vector<16x256xf32> -> vector<16x256xf32>
    %195 = arith.addf %186, %194 : vector<16x256xf32>
    %c4_104 = arith.constant 4 : index
    %c0_105 = arith.constant 0 : index
    %c0_106 = arith.constant 0 : index
    %196 = vector.load %arg8[%c4_104, %c0_105, %c0_106] : memref<9x16x8xbf16, #tpu.memory_space<vmem>>, vector<1x16x8xbf16>
    %197 = vector.shape_cast %196 : vector<1x16x8xbf16> to vector<16x8xbf16>
    %198 = arith.truncf %160 : vector<8x256xf32> to vector<8x256xbf16>
    %cst_107 = arith.constant dense<0.000000e+00> : vector<16x256xf32>
    %199 = tpu.matmul %197, %198, %cst_107 {dimension_numbers = #tpu.dot_dimension_numbers<[1], [0], [0], [1], [0, 0, 1, 1], [], []>} : vector<16x8xbf16>, vector<8x256xbf16>, vector<16x256xf32> -> vector<16x256xf32>
    %200 = arith.addf %195, %199 : vector<16x256xf32>
    %c5_108 = arith.constant 5 : index
    %c0_109 = arith.constant 0 : index
    %c0_110 = arith.constant 0 : index
    %201 = vector.load %arg8[%c5_108, %c0_109, %c0_110] : memref<9x16x8xbf16, #tpu.memory_space<vmem>>, vector<1x16x8xbf16>
    %202 = vector.shape_cast %201 : vector<1x16x8xbf16> to vector<16x8xbf16>
    %c255_i32_111 = arith.constant 255 : i32
    %203 = tpu.dynamic_rotate %160 by %c255_i32_111 dim 1 : vector<8x256xf32>, i32 -> vector<8x256xf32>
    %204 = vector.extract_strided_slice %0 {offsets = [5, 0], sizes = [1, 256], strides = [1, 1]} : vector<9x256xf32> to vector<1x256xf32>
    %205 = vector.broadcast %204 : vector<1x256xf32> to vector<8x256xf32>
    %206 = arith.mulf %203, %205 : vector<8x256xf32>
    %207 = arith.truncf %206 : vector<8x256xf32> to vector<8x256xbf16>
    %cst_112 = arith.constant dense<0.000000e+00> : vector<16x256xf32>
    %208 = tpu.matmul %202, %207, %cst_112 {dimension_numbers = #tpu.dot_dimension_numbers<[1], [0], [0], [1], [0, 0, 1, 1], [], []>} : vector<16x8xbf16>, vector<8x256xbf16>, vector<16x256xf32> -> vector<16x256xf32>
    %209 = arith.addf %200, %208 : vector<16x256xf32>
    %c6_113 = arith.constant 6 : index
    %c0_114 = arith.constant 0 : index
    %c0_115 = arith.constant 0 : index
    %210 = vector.load %arg8[%c6_113, %c0_114, %c0_115] : memref<9x16x8xbf16, #tpu.memory_space<vmem>>, vector<1x16x8xbf16>
    %211 = vector.shape_cast %210 : vector<1x16x8xbf16> to vector<16x8xbf16>
    %c241_i32_116 = arith.constant 241 : i32
    %212 = tpu.dynamic_rotate %160 by %c241_i32_116 dim 1 : vector<8x256xf32>, i32 -> vector<8x256xf32>
    %213 = vector.extract_strided_slice %0 {offsets = [6, 0], sizes = [1, 256], strides = [1, 1]} : vector<9x256xf32> to vector<1x256xf32>
    %214 = vector.broadcast %213 : vector<1x256xf32> to vector<8x256xf32>
    %215 = arith.mulf %212, %214 : vector<8x256xf32>
    %216 = arith.truncf %215 : vector<8x256xf32> to vector<8x256xbf16>
    %cst_117 = arith.constant dense<0.000000e+00> : vector<16x256xf32>
    %217 = tpu.matmul %211, %216, %cst_117 {dimension_numbers = #tpu.dot_dimension_numbers<[1], [0], [0], [1], [0, 0, 1, 1], [], []>} : vector<16x8xbf16>, vector<8x256xbf16>, vector<16x256xf32> -> vector<16x256xf32>
    %218 = arith.addf %209, %217 : vector<16x256xf32>
    %c7_118 = arith.constant 7 : index
    %c0_119 = arith.constant 0 : index
    %c0_120 = arith.constant 0 : index
    %219 = vector.load %arg8[%c7_118, %c0_119, %c0_120] : memref<9x16x8xbf16, #tpu.memory_space<vmem>>, vector<1x16x8xbf16>
    %220 = vector.shape_cast %219 : vector<1x16x8xbf16> to vector<16x8xbf16>
    %c240_i32_121 = arith.constant 240 : i32
    %221 = tpu.dynamic_rotate %160 by %c240_i32_121 dim 1 : vector<8x256xf32>, i32 -> vector<8x256xf32>
    %222 = vector.extract_strided_slice %0 {offsets = [7, 0], sizes = [1, 256], strides = [1, 1]} : vector<9x256xf32> to vector<1x256xf32>
    %223 = vector.broadcast %222 : vector<1x256xf32> to vector<8x256xf32>
    %224 = arith.mulf %221, %223 : vector<8x256xf32>
    %225 = arith.truncf %224 : vector<8x256xf32> to vector<8x256xbf16>
    %cst_122 = arith.constant dense<0.000000e+00> : vector<16x256xf32>
    %226 = tpu.matmul %220, %225, %cst_122 {dimension_numbers = #tpu.dot_dimension_numbers<[1], [0], [0], [1], [0, 0, 1, 1], [], []>} : vector<16x8xbf16>, vector<8x256xbf16>, vector<16x256xf32> -> vector<16x256xf32>
    %227 = arith.addf %218, %226 : vector<16x256xf32>
    %c8_123 = arith.constant 8 : index
    %c0_124 = arith.constant 0 : index
    %c0_125 = arith.constant 0 : index
    %228 = vector.load %arg8[%c8_123, %c0_124, %c0_125] : memref<9x16x8xbf16, #tpu.memory_space<vmem>>, vector<1x16x8xbf16>
    %229 = vector.shape_cast %228 : vector<1x16x8xbf16> to vector<16x8xbf16>
    %c239_i32_126 = arith.constant 239 : i32
    %230 = tpu.dynamic_rotate %160 by %c239_i32_126 dim 1 : vector<8x256xf32>, i32 -> vector<8x256xf32>
    %231 = vector.extract_strided_slice %0 {offsets = [8, 0], sizes = [1, 256], strides = [1, 1]} : vector<9x256xf32> to vector<1x256xf32>
    %232 = vector.broadcast %231 : vector<1x256xf32> to vector<8x256xf32>
    %233 = arith.mulf %230, %232 : vector<8x256xf32>
    %234 = arith.truncf %233 : vector<8x256xf32> to vector<8x256xbf16>
    %cst_127 = arith.constant dense<0.000000e+00> : vector<16x256xf32>
    %235 = tpu.matmul %229, %234, %cst_127 {dimension_numbers = #tpu.dot_dimension_numbers<[1], [0], [0], [1], [0, 0, 1, 1], [], []>} : vector<16x8xbf16>, vector<8x256xbf16>, vector<16x256xf32> -> vector<16x256xf32>
    %236 = arith.addf %227, %235 : vector<16x256xf32>
    %c0_128 = arith.constant 0 : index
    %c0_129 = arith.constant 0 : index
    %237 = vector.load %arg9[%c0_128, %c0_129] : memref<16x1xf32, #tpu.memory_space<vmem>>, vector<16x1xf32>
    %238 = vector.broadcast %237 : vector<16x1xf32> to vector<16x256xf32>
    %239 = arith.addf %236, %238 : vector<16x256xf32>
    %cst_130 = arith.constant 0.000000e+00 : f32
    %240 = vector.broadcast %cst_130 : f32 to vector<16x256xf32>
    %241 = arith.maximumf %239, %240 : vector<16x256xf32>
    %242 = arith.truncf %241 : vector<16x256xf32> to vector<16x256xbf16>
    %c0_131 = arith.constant 0 : index
    %c0_132 = arith.constant 0 : index
    %c0_133 = arith.constant 0 : index
    %243 = vector.load %arg10[%c0_131, %c0_132, %c0_133] : memref<9x8x16xbf16, #tpu.memory_space<vmem>>, vector<1x8x16xbf16>
    %244 = vector.shape_cast %243 : vector<1x8x16xbf16> to vector<8x16xbf16>
    %cst_134 = arith.constant dense<0.000000e+00> : vector<8x256xf32>
    %245 = tpu.matmul %244, %242, %cst_134 {dimension_numbers = #tpu.dot_dimension_numbers<[1], [0], [0], [1], [0, 0, 1, 1], [], []>} : vector<8x16xbf16>, vector<16x256xbf16>, vector<8x256xf32> -> vector<8x256xf32>
    %c17_i32_135 = arith.constant 17 : i32
    %246 = tpu.dynamic_rotate %245 by %c17_i32_135 dim 1 : vector<8x256xf32>, i32 -> vector<8x256xf32>
    %247 = vector.extract_strided_slice %0 {offsets = [0, 0], sizes = [1, 256], strides = [1, 1]} : vector<9x256xf32> to vector<1x256xf32>
    %248 = vector.broadcast %247 : vector<1x256xf32> to vector<8x256xf32>
    %249 = arith.mulf %246, %248 : vector<8x256xf32>
    %c1_136 = arith.constant 1 : index
    %c0_137 = arith.constant 0 : index
    %c0_138 = arith.constant 0 : index
    %250 = vector.load %arg10[%c1_136, %c0_137, %c0_138] : memref<9x8x16xbf16, #tpu.memory_space<vmem>>, vector<1x8x16xbf16>
    %251 = vector.shape_cast %250 : vector<1x8x16xbf16> to vector<8x16xbf16>
    %cst_139 = arith.constant dense<0.000000e+00> : vector<8x256xf32>
    %252 = tpu.matmul %251, %242, %cst_139 {dimension_numbers = #tpu.dot_dimension_numbers<[1], [0], [0], [1], [0, 0, 1, 1], [], []>} : vector<8x16xbf16>, vector<16x256xbf16>, vector<8x256xf32> -> vector<8x256xf32>
    %c16_i32_140 = arith.constant 16 : i32
    %253 = tpu.dynamic_rotate %252 by %c16_i32_140 dim 1 : vector<8x256xf32>, i32 -> vector<8x256xf32>
    %254 = vector.extract_strided_slice %0 {offsets = [1, 0], sizes = [1, 256], strides = [1, 1]} : vector<9x256xf32> to vector<1x256xf32>
    %255 = vector.broadcast %254 : vector<1x256xf32> to vector<8x256xf32>
    %256 = arith.mulf %253, %255 : vector<8x256xf32>
    %257 = arith.addf %249, %256 : vector<8x256xf32>
    %c2_141 = arith.constant 2 : index
    %c0_142 = arith.constant 0 : index
    %c0_143 = arith.constant 0 : index
    %258 = vector.load %arg10[%c2_141, %c0_142, %c0_143] : memref<9x8x16xbf16, #tpu.memory_space<vmem>>, vector<1x8x16xbf16>
    %259 = vector.shape_cast %258 : vector<1x8x16xbf16> to vector<8x16xbf16>
    %cst_144 = arith.constant dense<0.000000e+00> : vector<8x256xf32>
    %260 = tpu.matmul %259, %242, %cst_144 {dimension_numbers = #tpu.dot_dimension_numbers<[1], [0], [0], [1], [0, 0, 1, 1], [], []>} : vector<8x16xbf16>, vector<16x256xbf16>, vector<8x256xf32> -> vector<8x256xf32>
    %c15_i32_145 = arith.constant 15 : i32
    %261 = tpu.dynamic_rotate %260 by %c15_i32_145 dim 1 : vector<8x256xf32>, i32 -> vector<8x256xf32>
    %262 = vector.extract_strided_slice %0 {offsets = [2, 0], sizes = [1, 256], strides = [1, 1]} : vector<9x256xf32> to vector<1x256xf32>
    %263 = vector.broadcast %262 : vector<1x256xf32> to vector<8x256xf32>
    %264 = arith.mulf %261, %263 : vector<8x256xf32>
    %265 = arith.addf %257, %264 : vector<8x256xf32>
    %c3_146 = arith.constant 3 : index
    %c0_147 = arith.constant 0 : index
    %c0_148 = arith.constant 0 : index
    %266 = vector.load %arg10[%c3_146, %c0_147, %c0_148] : memref<9x8x16xbf16, #tpu.memory_space<vmem>>, vector<1x8x16xbf16>
    %267 = vector.shape_cast %266 : vector<1x8x16xbf16> to vector<8x16xbf16>
    %cst_149 = arith.constant dense<0.000000e+00> : vector<8x256xf32>
    %268 = tpu.matmul %267, %242, %cst_149 {dimension_numbers = #tpu.dot_dimension_numbers<[1], [0], [0], [1], [0, 0, 1, 1], [], []>} : vector<8x16xbf16>, vector<16x256xbf16>, vector<8x256xf32> -> vector<8x256xf32>
    %c1_i32_150 = arith.constant 1 : i32
    %269 = tpu.dynamic_rotate %268 by %c1_i32_150 dim 1 : vector<8x256xf32>, i32 -> vector<8x256xf32>
    %270 = vector.extract_strided_slice %0 {offsets = [3, 0], sizes = [1, 256], strides = [1, 1]} : vector<9x256xf32> to vector<1x256xf32>
    %271 = vector.broadcast %270 : vector<1x256xf32> to vector<8x256xf32>
    %272 = arith.mulf %269, %271 : vector<8x256xf32>
    %273 = arith.addf %265, %272 : vector<8x256xf32>
    %c4_151 = arith.constant 4 : index
    %c0_152 = arith.constant 0 : index
    %c0_153 = arith.constant 0 : index
    %274 = vector.load %arg10[%c4_151, %c0_152, %c0_153] : memref<9x8x16xbf16, #tpu.memory_space<vmem>>, vector<1x8x16xbf16>
    %275 = vector.shape_cast %274 : vector<1x8x16xbf16> to vector<8x16xbf16>
    %cst_154 = arith.constant dense<0.000000e+00> : vector<8x256xf32>
    %276 = tpu.matmul %275, %242, %cst_154 {dimension_numbers = #tpu.dot_dimension_numbers<[1], [0], [0], [1], [0, 0, 1, 1], [], []>} : vector<8x16xbf16>, vector<16x256xbf16>, vector<8x256xf32> -> vector<8x256xf32>
    %277 = arith.addf %273, %276 : vector<8x256xf32>
    %c5_155 = arith.constant 5 : index
    %c0_156 = arith.constant 0 : index
    %c0_157 = arith.constant 0 : index
    %278 = vector.load %arg10[%c5_155, %c0_156, %c0_157] : memref<9x8x16xbf16, #tpu.memory_space<vmem>>, vector<1x8x16xbf16>
    %279 = vector.shape_cast %278 : vector<1x8x16xbf16> to vector<8x16xbf16>
    %cst_158 = arith.constant dense<0.000000e+00> : vector<8x256xf32>
    %280 = tpu.matmul %279, %242, %cst_158 {dimension_numbers = #tpu.dot_dimension_numbers<[1], [0], [0], [1], [0, 0, 1, 1], [], []>} : vector<8x16xbf16>, vector<16x256xbf16>, vector<8x256xf32> -> vector<8x256xf32>
    %c255_i32_159 = arith.constant 255 : i32
    %281 = tpu.dynamic_rotate %280 by %c255_i32_159 dim 1 : vector<8x256xf32>, i32 -> vector<8x256xf32>
    %282 = vector.extract_strided_slice %0 {offsets = [5, 0], sizes = [1, 256], strides = [1, 1]} : vector<9x256xf32> to vector<1x256xf32>
    %283 = vector.broadcast %282 : vector<1x256xf32> to vector<8x256xf32>
    %284 = arith.mulf %281, %283 : vector<8x256xf32>
    %285 = arith.addf %277, %284 : vector<8x256xf32>
    %c6_160 = arith.constant 6 : index
    %c0_161 = arith.constant 0 : index
    %c0_162 = arith.constant 0 : index
    %286 = vector.load %arg10[%c6_160, %c0_161, %c0_162] : memref<9x8x16xbf16, #tpu.memory_space<vmem>>, vector<1x8x16xbf16>
    %287 = vector.shape_cast %286 : vector<1x8x16xbf16> to vector<8x16xbf16>
    %cst_163 = arith.constant dense<0.000000e+00> : vector<8x256xf32>
    %288 = tpu.matmul %287, %242, %cst_163 {dimension_numbers = #tpu.dot_dimension_numbers<[1], [0], [0], [1], [0, 0, 1, 1], [], []>} : vector<8x16xbf16>, vector<16x256xbf16>, vector<8x256xf32> -> vector<8x256xf32>
    %c241_i32_164 = arith.constant 241 : i32
    %289 = tpu.dynamic_rotate %288 by %c241_i32_164 dim 1 : vector<8x256xf32>, i32 -> vector<8x256xf32>
    %290 = vector.extract_strided_slice %0 {offsets = [6, 0], sizes = [1, 256], strides = [1, 1]} : vector<9x256xf32> to vector<1x256xf32>
    %291 = vector.broadcast %290 : vector<1x256xf32> to vector<8x256xf32>
    %292 = arith.mulf %289, %291 : vector<8x256xf32>
    %293 = arith.addf %285, %292 : vector<8x256xf32>
    %c7_165 = arith.constant 7 : index
    %c0_166 = arith.constant 0 : index
    %c0_167 = arith.constant 0 : index
    %294 = vector.load %arg10[%c7_165, %c0_166, %c0_167] : memref<9x8x16xbf16, #tpu.memory_space<vmem>>, vector<1x8x16xbf16>
    %295 = vector.shape_cast %294 : vector<1x8x16xbf16> to vector<8x16xbf16>
    %cst_168 = arith.constant dense<0.000000e+00> : vector<8x256xf32>
    %296 = tpu.matmul %295, %242, %cst_168 {dimension_numbers = #tpu.dot_dimension_numbers<[1], [0], [0], [1], [0, 0, 1, 1], [], []>} : vector<8x16xbf16>, vector<16x256xbf16>, vector<8x256xf32> -> vector<8x256xf32>
    %c240_i32_169 = arith.constant 240 : i32
    %297 = tpu.dynamic_rotate %296 by %c240_i32_169 dim 1 : vector<8x256xf32>, i32 -> vector<8x256xf32>
    %298 = vector.extract_strided_slice %0 {offsets = [7, 0], sizes = [1, 256], strides = [1, 1]} : vector<9x256xf32> to vector<1x256xf32>
    %299 = vector.broadcast %298 : vector<1x256xf32> to vector<8x256xf32>
    %300 = arith.mulf %297, %299 : vector<8x256xf32>
    %301 = arith.addf %293, %300 : vector<8x256xf32>
    %c8_170 = arith.constant 8 : index
    %c0_171 = arith.constant 0 : index
    %c0_172 = arith.constant 0 : index
    %302 = vector.load %arg10[%c8_170, %c0_171, %c0_172] : memref<9x8x16xbf16, #tpu.memory_space<vmem>>, vector<1x8x16xbf16>
    %303 = vector.shape_cast %302 : vector<1x8x16xbf16> to vector<8x16xbf16>
    %cst_173 = arith.constant dense<0.000000e+00> : vector<8x256xf32>
    %304 = tpu.matmul %303, %242, %cst_173 {dimension_numbers = #tpu.dot_dimension_numbers<[1], [0], [0], [1], [0, 0, 1, 1], [], []>} : vector<8x16xbf16>, vector<16x256xbf16>, vector<8x256xf32> -> vector<8x256xf32>
    %c239_i32_174 = arith.constant 239 : i32
    %305 = tpu.dynamic_rotate %304 by %c239_i32_174 dim 1 : vector<8x256xf32>, i32 -> vector<8x256xf32>
    %306 = vector.extract_strided_slice %0 {offsets = [8, 0], sizes = [1, 256], strides = [1, 1]} : vector<9x256xf32> to vector<1x256xf32>
    %307 = vector.broadcast %306 : vector<1x256xf32> to vector<8x256xf32>
    %308 = arith.mulf %305, %307 : vector<8x256xf32>
    %309 = arith.addf %301, %308 : vector<8x256xf32>
    %c0_175 = arith.constant 0 : index
    %c0_176 = arith.constant 0 : index
    %310 = vector.load %arg11[%c0_175, %c0_176] : memref<8x1xf32, #tpu.memory_space<vmem>>, vector<8x1xf32>
    %311 = vector.broadcast %310 : vector<8x1xf32> to vector<8x256xf32>
    %312 = arith.addf %309, %311 : vector<8x256xf32>
    %313 = arith.addf %312, %160 : vector<8x256xf32>
    %cst_177 = arith.constant 0.000000e+00 : f32
    %314 = vector.broadcast %cst_177 : f32 to vector<8x256xf32>
    %315 = arith.maximumf %313, %314 : vector<8x256xf32>
    %c0_178 = arith.constant 0 : index
    %c0_179 = arith.constant 0 : index
    %c0_180 = arith.constant 0 : index
    %316 = vector.load %arg12[%c0_178, %c0_179, %c0_180] : memref<1x8x256xf32, #tpu.memory_space<vmem>>, vector<1x8x256xf32>
    %317 = vector.shape_cast %316 : vector<1x8x256xf32> to vector<8x256xf32>
    %318 = vector.shape_cast %315 : vector<8x256xf32> to vector<1x8x256xf32>
    tpu.vector_store %arg12[%c0_178, %c0_179, %c0_180], %318 {strides = array<i32>} : memref<1x8x256xf32, #tpu.memory_space<vmem>>, vector<1x8x256xf32>,
    return
  }
  func.func @transform_0(%arg0: i32) -> (i32, i32, i32) {
    %c0_i32 = arith.constant 0 : i32
    %c0_i32_0 = arith.constant 0 : i32
    %c0_i32_1 = arith.constant 0 : i32
    return %arg0, %c0_i32, %c0_i32_0 : i32, i32, i32
  }
  func.func @transform_1(%arg0: i32) -> (i32, i32, i32) {
    %c0_i32 = arith.constant 0 : i32
    %c0_i32_0 = arith.constant 0 : i32
    %c0_i32_1 = arith.constant 0 : i32
    return %arg0, %c0_i32, %c0_i32_0 : i32, i32, i32
  }
  func.func @transform_2(%arg0: i32) -> (i32, i32) {
    %c0_i32 = arith.constant 0 : i32
    %c0_i32_0 = arith.constant 0 : i32
    %c0_i32_1 = arith.constant 0 : i32
    return %c0_i32, %c0_i32_0 : i32, i32
  }
  func.func @transform_3(%arg0: i32) -> (i32, i32, i32) {
    %c0_i32 = arith.constant 0 : i32
    %c0_i32_0 = arith.constant 0 : i32
    %c0_i32_1 = arith.constant 0 : i32
    %c0_i32_2 = arith.constant 0 : i32
    return %c0_i32, %c0_i32_0, %c0_i32_1 : i32, i32, i32
  }
  func.func @transform_4(%arg0: i32) -> (i32, i32) {
    %c0_i32 = arith.constant 0 : i32
    %c0_i32_0 = arith.constant 0 : i32
    %c0_i32_1 = arith.constant 0 : i32
    return %c0_i32, %c0_i32_0 : i32, i32
  }
  func.func @transform_5(%arg0: i32) -> (i32, i32, i32) {
    %c0_i32 = arith.constant 0 : i32
    %c0_i32_0 = arith.constant 0 : i32
    %c0_i32_1 = arith.constant 0 : i32
    %c0_i32_2 = arith.constant 0 : i32
    return %c0_i32, %c0_i32_0, %c0_i32_1 : i32, i32, i32
  }
  func.func @transform_6(%arg0: i32) -> (i32, i32) {
    %c0_i32 = arith.constant 0 : i32
    %c0_i32_0 = arith.constant 0 : i32
    %c0_i32_1 = arith.constant 0 : i32
    return %c0_i32, %c0_i32_0 : i32, i32
  }
  func.func @transform_7(%arg0: i32) -> (i32, i32, i32) {
    %c0_i32 = arith.constant 0 : i32
    %c0_i32_0 = arith.constant 0 : i32
    %c0_i32_1 = arith.constant 0 : i32
    %c0_i32_2 = arith.constant 0 : i32
    return %c0_i32, %c0_i32_0, %c0_i32_1 : i32, i32, i32
  }
  func.func @transform_8(%arg0: i32) -> (i32, i32) {
    %c0_i32 = arith.constant 0 : i32
    %c0_i32_0 = arith.constant 0 : i32
    %c0_i32_1 = arith.constant 0 : i32
    return %c0_i32, %c0_i32_0 : i32, i32
  }
  func.func @transform_9(%arg0: i32) -> (i32, i32, i32) {
    %c0_i32 = arith.constant 0 : i32
    %c0_i32_0 = arith.constant 0 : i32
    %c0_i32_1 = arith.constant 0 : i32
    %c0_i32_2 = arith.constant 0 : i32
    return %c0_i32, %c0_i32_0, %c0_i32_1 : i32, i32, i32
  }
  func.func @transform_10(%arg0: i32) -> (i32, i32) {
    %c0_i32 = arith.constant 0 : i32
    %c0_i32_0 = arith.constant 0 : i32
    %c0_i32_1 = arith.constant 0 : i32
    return %c0_i32, %c0_i32_0 : i32, i32
  }
  func.func @transform_11(%arg0: i32) -> (i32, i32, i32) {
    %c0_i32 = arith.constant 0 : i32
    %c0_i32_0 = arith.constant 0 : i32
    %c0_i32_1 = arith.constant 0 : i32
    return %arg0, %c0_i32, %c0_i32_0 : i32, i32, i32
  }
}

</mosaic_0001>

<bundles_post_ra>
// kernel: tpu_custom_call.1
= control target key start
LH: loop header
LB: loop body
LE: loop exit
PB: predicated region body
PF: predicated region fallthrough
CT: control target
= control target key end

     0   :  { %s4099_s0 = inlined_call_operand.vmem [shape: f32[2,8,256], index: 0, kind: input, shape index: {}]   ;;  %s4100_s1 = inlined_call_operand.vmem [shape: f32[2,8,256], index: 1, kind: input, shape index: {}]   ;;  %s4101_s2 = inlined_call_operand.vmem [shape: f32[9,256], index: 2, kind: input, shape index: {}]   ;;  %s4102_s3 = inlined_call_operand.vmem [shape: bf16[9,16,8], index: 3, kind: input, shape index: {}]   ;;  %s4103_s4 = inlined_call_operand.vmem [shape: f32[16,1], index: 4, kind: input, shape index: {}]   ;;  %s4104_s5 = inlined_call_operand.vmem [shape: bf16[9,8,16], index: 5, kind: input, shape index: {}]   ;;  %s4105_s6 = inlined_call_operand.vmem [shape: f32[8,1], index: 6, kind: input, shape index: {}]   ;;  %s4106_s7 = inlined_call_operand.vmem [shape: bf16[9,16,8], index: 7, kind: input, shape index: {}]   ;;  %s4107_s8 = inlined_call_operand.vmem [shape: f32[16,1], index: 8, kind: input, shape index: {}]   ;;  %s4108_s9 = inlined_call_operand.vmem [shape: bf16[9,8,16], index: 9, kind: input, shape index: {}]   ;;  %s4109_s10 = inlined_call_operand.vmem [shape: f32[8,1], index: 10, kind: input, shape index: {}]   ;;  %s4110_s11 = inlined_call_operand.hbm [shape: f32[2,8,256], index: 11, kind: output, shape index: {}]  }
   0x1   :  { %4128 = sst [smem:[#allocation5_spill]] %s4099_s0 }
   0x2   :  { %4129 = sst [smem:[#allocation6_spill]] %s4100_s1 }
   0x3   :  { %4130 = sst [smem:[#allocation7_spill]] %s4102_s3 }
   0x4   :  { %4131 = sst [smem:[#allocation8_spill]] %s4103_s4 }
   0x5   :  { %16 = vsyncpa [#allocation3], 0 }
   0x6   :  { %18 = vsyncpa [#allocation3 + $0x1], 0  ;;  %s3340_s17 = smov 0   ;;  %s3342_s18 = smov 0  }
   0x7   :  { %s3344_s19 = smov 0   ;;  %s3346_s20 = smov 0  }
   0x8 LB: > { %s3361_s21 = sadd.s32 4294967295, %s3268_s20   ;;  %s2933_s22 = sadd.s32 4294967294, %s3268_s20   ;;  %s3268_s20 = sphi %s3346_s20, %s4150_s20   ;;  %s3264_s19 = sphi %s3344_s19, %s4149_s19   ;;  %s3260_s18 = sphi %s3342_s18, %s4148_s18   ;;  %s3256_s17 = sphi %s3340_s17, %s4147_s17  }
   0x9   : > { %s3365_s23 = sadd.s32 1, %s3268_s20   ;;  %s272_s24 = sadd.s32 1, %s3264_s19 }
   0xa   : > { %s269_s25 = ssub.s32 %s3268_s20, %s3365_s23  ;;  %p282_p0 = scmp.ne.s32.totalorder %s3264_s19, %s3260_s18 }
   0xb   : > { %p270_p1 = scmp.eq.s32.totalorder %s269_s25, 0  ;;  %p283_p2 = scmp.eq.s32.totalorder %s3361_s21, 1 }
   0xc   : > { %p288_p3 = scmp.ne.s32.totalorder %s3260_s18, %s3256_s17  ;;  %p289_p4 = scmp.eq.s32.totalorder %s2933_s22, 1 }
   0xd   : > { %s3376_s26 = scalar_select %p270_p1, %s3264_s19, %s272_s24  }
   0xe   : > { %p3378_p5 = por %p283_p2, %p282_p0  ;;  %p3382_p6 = por %p289_p4, %p288_p3 }
   0xf   : > { %p2936_p7 = scmp.ge.s32.totalorder %s3268_s20, 1  ;;  %p350_p8 = scmp.lt.s32.totalorder %s3268_s20, 3 }
  0x11   : > { %p351_p9 = pnand %p2936_p7, %p350_p8 }
  0x12   : > { %p395_p10 = scmp.lt.s32.totalorder (!%p351_p9), %s3361_s21, 1  ;;  %s4134_s0 = sld [smem:[#allocation5_spill]] (!%p351_p9)  ;;  %v3270_v1 = vmov (!%p351_p9), 0   ;;  %v420_v3 = vlaneseq (!%p351_p9)  ;;  %v3444_v6 = vld [vmem:[%s4101_s2] sm:$0xff] (!%p351_p9)  ;;  %v3449_v7 = vld [vmem:[%s4101_s2 + $0x8] sm:$0xff] (!%p351_p9)  ;;  %vm468_vm3 = vcmask (!%p351_p9), 1043456  }
  0x13   : > { %354 = sbr.rel (%p351_p9) target bundleno = 1747 (0x6d3), region = 64  ;;  %507 = vmatprep.mubr.bf16.mxu0 (!%p351_p9), %v3270_v1  ;;  %s4124_s15 = smov (!%p351_p9), 16   ;;  %3185 = vset.pattern.permute.xlu1 (!%p351_p9), %v3270_v1  ;;  %v1655_v12 = vld [vmem:[%s4105_s6] sm:$0xff] (!%p351_p9)  ;;  %vm464_vm4 = vcmask (!%p351_p9), 64512   ;;  %vm1162_vm10 = vcmask (!%p351_p9), 130048  }
  0x14   : > { %s4126_s16 = smov (!%p351_p9), 17   ;;  %3184 = vset.pattern.permute.xlu0 (!%p351_p9), %v3270_v1  ;;  %1198 = vmatprep.mubr.bf16.mxu1 (!%p351_p9), %v3270_v1  ;;  %s4122_s22 = smov (!%p351_p9), 15   ;;  %v3438_v4 = vshrl.u32 (!%p351_p9), %v420_v3, 7  ;;  %v3466_v13 = vand.u32 (!%p351_p9), 127, %v420_v3 }
  0x15   : > { %s4116_s24 = smov (!%p351_p9), 1   ;;  %s4114_s25 = smov (!%p351_p9), 127  }
  0x16   : > { %s4112_s12 = smov (!%p351_p9), 113   ;;  %s4120_s13 = smov (!%p351_p9), 112   ;;  %v985_v5 = vsub.s32 (!%p351_p9), 7, %v3438_v4  ;;  %v449_v14 = vsub.s32 (!%p351_p9), 1, %v3438_v4  ;;  %v427_v15 = vsub.s32 (!%p351_p9), 0, %v3438_v4  ;;  %v587_v18 = vsub.s32 (!%p351_p9), 2, %v3438_v4 }
  0x17   : > { %s4135_s4 = sld [smem:[#allocation8_spill]] (!%p351_p9)  ;;  %vm444_vm0 = vcmp.lt.s32.totalorder (!%p351_p9), %v3466_v13, 16  ;;  %vm422_vm1 = vcmp.lt.s32.totalorder (!%p351_p9), %v3466_v13, 17  ;;  %vm582_vm2 = vcmp.lt.s32.totalorder (!%p351_p9), %v3466_v13, 15  ;;  %s4136_s3 = sld [smem:[#allocation7_spill]] (!%p351_p9)  ;;  %v670_v47 = vsub.s32 (!%p351_p9), 3, %v3438_v4 }
  0x18   : > { %v3452_v8 = vrot.slane (!%p351_p9), %v3444_v6, %v985_v5  ;;  %v3455_v9 = vrot.slane (!%p351_p9), %v3449_v7, %v985_v5  ;;  %v3474_v19 = vrot.slane (!%p351_p9), %v3444_v6, %v449_v14  ;;  %v3477_v20 = vrot.slane (!%p351_p9), %v3444_v6, %v427_v15  ;;  %s4145_s1 = sld [smem:[#allocation6_spill]] (!%p351_p9) }
  0x19   : > { %v3480_v21 = vrot.slane (!%p351_p9), %v3449_v7, %v427_v15  ;;  %v3483_v22 = vrot.slane (!%p351_p9), %v3449_v7, %v449_v14  ;;  %v3487_v25 = vrot.slane (!%p351_p9), %v3449_v7, %v587_v18  ;;  %v3512_v45 = vrot.slane (!%p351_p9), %v3444_v6, %v587_v18 }
  0x1a   : > { %s3390_s29 = scalar_select %p395_p10, %s3361_s21, 1  ;;  %vm665_vm5 = vcmp.lt.s32.totalorder %v3466_v13, 1  ;;  %v3523_v52 = vrot.slane %v3449_v7, %v670_v47  ;;  %v3533_v58 = vrot.slane %v3444_v6, %v670_v47  ;;  %vm814_vm6 = vcmp.lt.s32.totalorder %v3466_v13, 127 }
  0x1b   : > { %vm897_vm7 = vcmp.lt.s32.totalorder %v3466_v13, 113  ;;  %vm980_vm8 = vcmp.lt.s32.totalorder %v3466_v13, 112  ;;  %vm1063_vm9 = vcmp.lt.s32.totalorder %v3466_v13, 111 }
  0x1c   : > { %s4111_s30 = sshll.u32 %s3390_s29, 4 }
  0x1d   : > { %s399_s14 = scalar_lea.vmem %s4134_s0, %s4111_s30  ;;  %v1140_v10 = vld [vmem:[%s4135_s4 + $0x8] sm:$0xff]  ;;  %v1139_v11 = vld [vmem:[%s4135_s4] sm:$0xff]  ;;  %v3188_v63 = vld [vmem:[%s4136_s3 + $0x10] sm:$0xff]   ;;  %s4143_s30 = smov 111  }
  0x1e   : > { %v3398_v0 = vld [vmem:[%s399_s14] sm:$0xff]  ;;  %v3405_v2 = vld [vmem:[%s399_s14 + $0x8] sm:$0xff]  ;;  %s4118_s14 = smov 111   ;;  %v3189_v18 = vld [vmem:[%s4136_s3 + $0x18] sm:$0xff]   ;;  %s4146_s0 = smov 17  }
  0x1f   : > { %440 = vrot.lane.b32.xlu0 %v3398_v0, %s4124_s15  ;;  %416 = vrot.lane.b32.xlu1 %v3398_v0, %s4126_s16  ;;  %v3186_v42 = vld [vmem:[%s4136_s3 + $0x8] sm:$0xff]   ;;  %v3187_v56 = vld [vmem:[%s4136_s3] sm:$0xff]   ;;  %v745_v5 = vpack.c.bf16 %v3405_v2, %v3405_v2 }
  0x23   : > { %442 = vrot.lane.b32.xlu0 %v3405_v2, %s4124_s15  ;;  %418 = vrot.lane.b32.xlu1 %v3405_v2, %s4126_s16  ;;  %s4137_s15 = smov 16  }
  0x27   : > { %580 = vrot.lane.b32.xlu1 %v3405_v2, %s4122_s22  ;;  %578 = vrot.lane.b32.xlu0 %v3398_v0, %s4122_s22  ;;  %s4138_s22 = smov 15  }
  0x2b   : > { %663 = vrot.lane.b32.xlu1 %v3405_v2, %s4116_s24  ;;  %661 = vrot.lane.b32.xlu0 %v3398_v0, %s4116_s24  ;;  %s4144_s24 = sshll.u32 %s3390_s29, 4 }
  0x2f   : > { %812 = vrot.lane.b32.xlu1 %v3405_v2, %s4114_s25  ;;  %810 = vrot.lane.b32.xlu0 %v3398_v0, %s4114_s25  ;;  %s4139_s25 = smov 1  }
  0x33   : > { %895 = vrot.lane.b32.xlu1 %v3405_v2, %s4112_s12  ;;  %893 = vrot.lane.b32.xlu0 %v3398_v0, %s4112_s12  ;;  %s4140_s12 = smov 127  }
  0x37   : > { %978 = vrot.lane.b32.xlu1 %v3405_v2, %s4120_s13  ;;  %976 = vrot.lane.b32.xlu0 %v3398_v0, %s4120_s13  ;;  %s4141_s13 = smov 113  }
  0x3b   : > { %1061 = vrot.lane.b32.xlu1 %v3405_v2, %s4118_s14  ;;  %1059 = vrot.lane.b32.xlu0 %v3398_v0, %s4118_s14  ;;  %s4142_s14 = smov 112  }
  0x3f   : > { %1148 = vperm.xlu1 %3185, %v1140_v10   ;;  %1143 = vperm.xlu0 %3184, %v1139_v11   ;;  %v819_v10 = vsub.s32 5, %v3438_v4 }
  0x41   : > { %v3553_v14 = vrot.slane %v3449_v7, %v819_v10 }
  0x43   : > { %1658 = vperm.xlu1 %3185, %v1655_v12  }
  0x91   : > { %v441_v16 = vpop.permute.xlu0 %440  ;;  %v417_v17 = vpop.permute.xlu1 %416 }
  0x95   : > { %v443_v23 = vpop.permute.xlu0 %442  ;;  %v419_v24 = vpop.permute.xlu1 %418 }
  0x96   : > { %v445_v26 = vsel %vm444_vm0, %v441_v16, %v443_v23  ;;  %v446_v27 = vsel %vm444_vm0, %v443_v23, %v441_v16  ;;  %v423_v28 = vsel %vm422_vm1, %v417_v17, %v419_v24  ;;  %v424_v29 = vsel %vm422_vm1, %v419_v24, %v417_v17 }
  0x97   : > { %v455_v30 = vmul.f32 %v3474_v19, %v446_v27  ;;  %v433_v31 = vmul.f32 %v3477_v20, %v424_v29  ;;  %v434_v32 = vmul.f32 %v3480_v21, %v423_v28  ;;  %v456_v33 = vmul.f32 %v3483_v22, %v445_v26 }
  0x98   : > { %v744_v16 = vpack.c.bf16 %v3398_v0, %v3398_v0  ;;  %v3565_v24 = vrot.slane %v3444_v6, %v819_v10  ;;  %v902_v27 = vsub.s32 6, %v3438_v4 }
  0x99   : > { %v435_v34 = vpack.c.bf16 %v433_v31, %v433_v31  ;;  %v436_v35 = vpack.c.bf16 %v434_v32, %v434_v32  ;;  %v458_v36 = vpack.c.bf16 %v456_v33, %v456_v33  ;;  %v457_v37 = vpack.c.bf16 %v455_v30, %v455_v30  ;;  %v581_v38 = vpop.permute.xlu1 %580  ;;  %v579_v39 = vpop.permute.xlu0 %578 }
  0x9a   : > { %v583_v40 = vsel %vm582_vm2, %v579_v39, %v581_v38  ;;  %v584_v48 = vsel %vm582_vm2, %v581_v38, %v579_v39  ;;  %v755_v23 = vsel %vm468_vm3, %v744_v16, 0  ;;  %v3576_v32 = vrot.slane %v3449_v7, %v902_v27 }
  0x9b   : > { %2945 = vmatprep.subr.msk.bf16.mxu0 %vm468_vm3, %v458_v36  ;;  %v470_v41 = vsel %vm468_vm3, %v457_v37, 0  ;;  %v594_v43 = vmul.f32 %v3487_v25, %v583_v40  ;;  %v527_v44 = vsel %vm468_vm3, %v435_v34, 0  ;;  %v593_v51 = vmul.f32 %v3512_v45, %v584_v48 }
  0x9c   : > { %476 = vmatpush1.bf16.msra.mxu0 %v470_v41  ;;  %v3586_v37 = vrot.slane %v3444_v6, %v902_v27 }
  0x9d   : > { %2948 = vmatprep.subr.msk.bf16.mxu0 %vm468_vm3, %v436_v35  ;;  %v596_v46 = vpack.c.bf16 %v594_v43, %v594_v43  ;;  %v664_v49 = vpop.permute.xlu1 %663  ;;  %v662_v50 = vpop.permute.xlu0 %661  ;;  %v595_v54 = vpack.c.bf16 %v593_v51, %v593_v51  ;;  %v3190_v35 = vld [vmem:[%s4136_s3 + $0x20] sm:$0xff]  }
  0x9e   : > { %v666_v53 = vsel %vm665_vm5, %v662_v50, %v664_v49  ;;  %v667_v60 = vsel %vm665_vm5, %v664_v49, %v662_v50 }
  0x9f   : > { %2946 = vmatmul.mubr.msk.bf16.vlgmr.msra.gmra.mrb[0].mxu0 %vm464_vm4, %v3186_v42  ;;  %v677_v55 = vmul.f32 %v3523_v52, %v666_v53  ;;  %v606_v57 = vsel %vm468_vm3, %v595_v54, 0  ;;  %v676_v61 = vmul.f32 %v3533_v58, %v667_v60  ;;  %v3612_v53 = vld [vmem:[%s4101_s2 + $0x18] ss:$0 sm:$0xff] }
  0xa0   : > { %533 = vmatpush1.bf16.msra.mxu0 %v527_v44  ;;  %564 = vmatprep.mubr.bf16.mxu0 %v3270_v1  ;;  %v3191_v44 = vld [vmem:[%s4136_s3 + $0x28] sm:$0xff]  }
  0xa1   : > { %2953 = vmatprep.subr.msk.bf16.mxu0 %vm468_vm3, %v596_v46  ;;  %v679_v59 = vpack.c.bf16 %v677_v55, %v677_v55  ;;  %v678_v62 = vpack.c.bf16 %v676_v61, %v676_v61  ;;  %v813_v11 = vpop.permute.xlu1 %812  ;;  %v811_v12 = vpop.permute.xlu0 %810  ;;  %v3624_v61 = vld [vmem:[%s4101_s2 + $0x10] ss:$0 sm:$0xff] }
  0xa2   : > { %v816_v15 = vsel %vm814_vm6, %v813_v11, %v811_v12  ;;  %v815_v28 = vsel %vm814_vm6, %v811_v12, %v813_v11  ;;  %v3194_v11 = vld [vmem:[%s4136_s3 + $0x40] sm:$0xff]  }
  0xa3   : > { %v689_v3 = vsel %vm468_vm3, %v678_v62, 0  ;;  %v826_v17 = vmul.f32 %v3553_v14, %v816_v15  ;;  %v825_v31 = vmul.f32 %v3565_v24, %v815_v28 }
  0xa5   : > { %v828_v26 = vpack.c.bf16 %v826_v17, %v826_v17  ;;  %v896_v29 = vpop.permute.xlu1 %895  ;;  %v894_v30 = vpop.permute.xlu0 %893  ;;  %v827_v33 = vpack.c.bf16 %v825_v31, %v825_v31 }
  0xa6   : > { %v899_v4 = vsel %vm897_vm7, %v896_v29, %v894_v30  ;;  %v898_v7 = vsel %vm897_vm7, %v894_v30, %v896_v29 }
  0xa7   : > { %v909_v34 = vmul.f32 %v3576_v32, %v899_v4  ;;  %v838_v36 = vsel %vm468_vm3, %v827_v33, 0  ;;  %v908_v41 = vmul.f32 %v3586_v37, %v898_v7  ;;  %v2990_v7 = vld [vmem:[%s4104_s5 + $0x8] sm:$0xf] }
  0xa9   : > { %v911_v38 = vpack.c.bf16 %v909_v34, %v909_v34  ;;  %v979_v39 = vpop.permute.xlu1 %978  ;;  %v977_v40 = vpop.permute.xlu0 %976  ;;  %v910_v42 = vpack.c.bf16 %v908_v41, %v908_v41  ;;  %v2996_v41 = vld [vmem:[%s4104_s5 + $0x14] sm:$0xf] }
  0xaa   : > { %v982_v6 = vsel %vm980_vm8, %v979_v39, %v977_v40  ;;  %v981_v48 = vsel %vm980_vm8, %v977_v40, %v979_v39  ;;  %v2992_v39 = vld [vmem:[%s4104_s5 + $0xc] sm:$0xf]  ;;  %v2994_v40 = vld [vmem:[%s4104_s5 + $0x10] sm:$0xf] }
  0xab   : > { %2949 = vmatmul.mubr.msk.bf16.vlgmr.msra.gmra.mrb[0].mxu0 %vm464_vm4, %v3187_v56  ;;  %v992_v43 = vmul.f32 %v3455_v9, %v982_v6  ;;  %v921_v46 = vsel %vm468_vm3, %v910_v42, 0  ;;  %v991_v51 = vmul.f32 %v3452_v8, %v981_v48  ;;  %v2998_v6 = vld [vmem:[%s4104_s5 + $0x18] sm:$0xf]  ;;  %v3000_v42 = vld [vmem:[%s4104_s5 + $0x1c] sm:$0xf] }
  0xac   : > { %612 = vmatpush1.bf16.msra.mxu0 %v606_v57  ;;  %643 = vmatprep.mubr.bf16.mxu0 %v3270_v1  ;;  %v3192_v57 = vld [vmem:[%s4136_s3 + $0x30] sm:$0xff]  }
  0xad   : > { %2958 = vmatprep.subr.msk.bf16.mxu0 %vm468_vm3, %v679_v59  ;;  %v994_v47 = vpack.c.bf16 %v992_v43, %v992_v43  ;;  %v1062_v49 = vpop.permute.xlu1 %1061  ;;  %v1060_v50 = vpop.permute.xlu0 %1059  ;;  %v993_v55 = vpack.c.bf16 %v991_v51, %v991_v51  ;;  %v3002_v43 = vld [vmem:[%s4104_s5 + $0x20] sm:$0xf] }
  0xae   : > { %v1065_v54 = vsel %vm1063_vm9, %v1062_v49, %v1060_v50  ;;  %v1064_v62 = vsel %vm1063_vm9, %v1060_v50, %v1062_v49 }
  0xaf   : > { %v1075_v56 = vmul.f32 %v3612_v53, %v1065_v54  ;;  %v1004_v59 = vsel %vm468_vm3, %v993_v55, 0 }
  0xb1   : > { %v1077_v60 = vpack.c.bf16 %v1075_v56, %v1075_v56 }
  0xb7   : > { %2954 = vmatmul.mubr.msk.bf16.vlgmr.msra.gmra.mrb[0].mxu0 %vm464_vm4, %v3188_v63  ;;  %v1074_v63 = vmul.f32 %v3624_v61, %v1064_v62 }
  0xb8   : > { %695 = vmatpush1.bf16.msra.mxu0 %v689_v3  ;;  %726 = vmatprep.mubr.bf16.mxu0 %v3270_v1 }
  0xb9   : > { %2963 = vmatprep.subr.msk.bf16.mxu0 %vm468_vm3, %v745_v5  ;;  %v1076_v3 = vpack.c.bf16 %v1074_v63, %v1074_v63  ;;  %v3193_v5 = vld [vmem:[%s4136_s3 + $0x38] sm:$0xff]   ;;  %s404_s3 = scalar_lea.vmem %s4145_s1, %s4144_s24  ;;  %s3279_s24 = smov [#allocation2]  }
  0xbb   : > { %v1087_v10 = vsel %vm468_vm3, %v1076_v3, 0 }
  0xbe   : > { %v1144_v12 = vpop.permute.xlu0 %1143 }
  0xc3   : > { %2959 = vmatmul.mubr.msk.bf16.vlgmr.msra.gmra.mrb[0].mxu0 %vm464_vm4, %v3189_v18  ;;  %v1149_v18 = vpop.permute.xlu1 %1148 }
  0xc4   : > { %761 = vmatpush1.bf16.msra.mxu0 %v755_v23  ;;  %792 = vmatprep.mubr.bf16.mxu0 %v3270_v1 }
  0xc5   : > { %2968 = vmatprep.subr.msk.bf16.mxu0 %vm468_vm3, %v828_v26 }
  0xcf   : > { %2964 = vmatmul.mubr.msk.bf16.vlgmr.msra.gmra.mrb[0].mxu0 %vm464_vm4, %v3190_v35 }
  0xd0   : > { %844 = vmatpush1.bf16.msra.mxu0 %v838_v36  ;;  %875 = vmatprep.mubr.bf16.mxu0 %v3270_v1  ;;  %v1161_v36 = vld [vmem:[%s4104_s5] sm:$0xf] }
  0xd1   : > { %2973 = vmatprep.subr.msk.bf16.mxu0 %vm468_vm3, %v911_v38  ;;  %v2988_v38 = vld [vmem:[%s4104_s5 + $0x4] sm:$0xf] }
  0xdb   : > { %2969 = vmatmul.mubr.msk.bf16.vlgmr.msra.gmra.mrb[0].mxu0 %vm464_vm4, %v3191_v44 }
  0xdc   : > { %927 = vmatpush1.bf16.msra.mxu0 %v921_v46  ;;  %958 = vmatprep.mubr.bf16.mxu0 %v3270_v1 }
  0xdd   : > { %2978 = vmatprep.subr.msk.bf16.mxu0 %vm468_vm3, %v994_v47 }
  0xe7   : > { %2974 = vmatmul.mubr.msk.bf16.vlgmr.msra.gmra.mrb[0].mxu0 %vm464_vm4, %v3192_v57 }
  0xe8   : > { %1010 = vmatpush1.bf16.msra.mxu0 %v1004_v59  ;;  %1041 = vmatprep.mubr.bf16.mxu0 %v3270_v1 }
  0xe9   : > { %2985 = vmatprep.subr.msk.bf16.mxu0 %vm468_vm3, %v1077_v60 }
  0xf3   : > { %2979 = vmatmul.mubr.msk.bf16.vlgmr.msra.gmra.mrb[0].mxu0 %vm464_vm4, %v3193_v5 }
  0xf4   : > { %1093 = vmatpush1.bf16.msra.mxu0 %v1087_v10  ;;  %1124 = vmatprep.mubr.bf16.mxu0 %v3270_v1 }
  0xff   : > { %2986 = vmatmul.mubr.msk.bf16.vlgmr.msra.gmra.mrb[0].mxu0 %vm464_vm4, %v3194_v11 }
 0x100   : > { %1740 = vmatprep.mubr.bf16.mxu0 %v3270_v1 }
 0x1d2   : > { %v1126_v15 = vpop.f32.mrb[0].mxu0 }
 0x1d3   : > { %v1151_v16 = vadd.f32 %v1144_v12, %v1126_v15  ;;  %v1128_v17 = vpop.f32.mrb[1].mxu0 }
 0x1d4   : > { %v1152_v23 = vadd.f32 %v1144_v12, %v1128_v17  ;;  %v1130_v26 = vpop.f32.mrb[2].mxu0 }
 0x1d5   : > { %v1153_v27 = vadd.f32 %v1149_v18, %v1130_v26  ;;  %v1132_v28 = vpop.f32.mrb[3].mxu0  ;;  %v1155_v30 = vmax.f32 %v1151_v16, 0.0 }
 0x1d6   : > { %v1154_v29 = vadd.f32 %v1149_v18, %v1132_v28  ;;  %v1156_v4 = vmax.f32 %v1152_v23, 0.0 }
 0x1d7   : > { %v1157_v31 = vmax.f32 %v1153_v27, 0.0 }
 0x1d8   : > { %v1158_v33 = vmax.f32 %v1154_v29, 0.0 }
 0x1d9   : > { %v1159_v34 = vpack.c.bf16 %v1157_v31, %v1155_v30 }
 0x1da   : > { %v1160_v35 = vpack.c.bf16 %v1158_v33, %v1156_v4 }
 0x1dc   : > { %1166 = vmatprep.subr.bf16.mxu1 %v1160_v35 }
 0x1dd   : > { %1167 = vmatpush1.bf16.msra.mxu1 %v1159_v34 }
 0x1de   : > { %1220 = vmatprep.subr.bf16.mxu1 %v1160_v35 }
 0x1e0   : > { %2987 = vmatmul.mubr.msk.bf16.vlgmr.msra.gmra.mrb[0].mxu1 %vm1162_vm10, %v1161_v36 }
 0x1e1   : > { %1221 = vmatpush1.bf16.msra.mxu1 %v1159_v34  ;;  %1252 = vmatprep.mubr.bf16.mxu1 %v3270_v1 }
 0x1e2   : > { %1276 = vmatprep.subr.bf16.mxu1 %v1160_v35 }
 0x1e8   : > { %2989 = vmatmul.mubr.msk.bf16.vlgmr.msra.gmra.mrb[4].mxu1 %vm1162_vm10, %v2988_v38  ;;  %v3708_v38 = vpop.permute.xlu1 %1658 }
 0x1e9   : > { %1277 = vmatpush1.bf16.msra.mxu1 %v1159_v34  ;;  %1308 = vmatprep.mubr.bf16.mxu1 %v3270_v1 }
 0x1ea   : > { %1332 = vmatprep.subr.bf16.mxu1 %v1160_v35 }
 0x1f0   : > { %2991 = vmatmul.mubr.msk.bf16.vlgmr.msra.gmra.mrb[8].mxu1 %vm1162_vm10, %v2990_v7 }
 0x1f1   : > { %1333 = vmatpush1.bf16.msra.mxu1 %v1159_v34  ;;  %1364 = vmatprep.mubr.bf16.mxu1 %v3270_v1 }
 0x1f2   : > { %1388 = vmatprep.subr.bf16.mxu1 %v1160_v35 }
 0x1f8   : > { %2993 = vmatmul.mubr.msk.bf16.vlgmr.msra.gmra.mrb[12].mxu1 %vm1162_vm10, %v2992_v39 }
 0x1f9   : > { %1389 = vmatpush1.bf16.msra.mxu1 %v1159_v34  ;;  %1420 = vmatprep.mubr.bf16.mxu1 %v3270_v1 }
 0x1fa   : > { %1436 = vmatprep.subr.bf16.mxu1 %v1160_v35 }
 0x200   : > { %2995 = vmatmul.mubr.msk.bf16.vlgmr.msra.gmra.mrb[16].mxu1 %vm1162_vm10, %v2994_v40 }
 0x201   : > { %1437 = vmatpush1.bf16.msra.mxu1 %v1159_v34  ;;  %1468 = vmatprep.mubr.bf16.mxu1 %v3270_v1 }
 0x202   : > { %1492 = vmatprep.subr.bf16.mxu1 %v1160_v35 }
 0x208   : > { %2997 = vmatmul.mubr.msk.bf16.vlgmr.msra.gmra.mrb[20].mxu1 %vm1162_vm10, %v2996_v41 }
 0x209   : > { %1493 = vmatpush1.bf16.msra.mxu1 %v1159_v34  ;;  %1524 = vmatprep.mubr.bf16.mxu1 %v3270_v1 }
 0x20a   : > { %1548 = vmatprep.subr.bf16.mxu1 %v1160_v35 }
 0x210   : > { %2999 = vmatmul.mubr.msk.bf16.vlgmr.msra.gmra.mrb[24].mxu1 %vm1162_vm10, %v2998_v6 }
 0x211   : > { %1549 = vmatpush1.bf16.msra.mxu1 %v1159_v34  ;;  %1580 = vmatprep.mubr.bf16.mxu1 %v3270_v1 }
 0x212   : > { %1604 = vmatprep.subr.bf16.mxu1 %v1160_v35 }
 0x218   : > { %3001 = vmatmul.mubr.msk.bf16.vlgmr.msra.gmra.mrb[28].mxu1 %vm1162_vm10, %v3000_v42 }
 0x219   : > { %1605 = vmatpush1.bf16.msra.mxu1 %v1159_v34  ;;  %1636 = vmatprep.mubr.bf16.mxu1 %v3270_v1 }
 0x220   : > { %3003 = vmatmul.mubr.msk.bf16.vlgmr.msra.gmra.mrb[32].mxu1 %vm1162_vm10, %v3002_v43 }
 0x221   : > { %2376 = vmatprep.mubr.bf16.mxu1 %v3270_v1 }
 0x2b3   : > { %v1200_v44 = vpop.f32.mrb[0].mxu1 }
 0x2b4   : > { %1207 = vrot.lane.b32.xlu1 %v1200_v44, %s4126_s16  ;;  %v1202_v46 = vpop.f32.mrb[1].mxu1 }
 0x2b5   : > { %1209 = vrot.lane.b32.xlu0 %v1202_v46, %s4126_s16  ;;  %v1204_v47 = vpop.f32.mrb[2].mxu1 }
 0x2b6   : > { %v1205_v48 = vpop.f32.mrb[3].mxu1 }
 0x2bb   : > { %v1254_v49 = vpop.f32.mrb[4].mxu1 }
 0x2bc   : > { %1261 = vrot.lane.b32.xlu1 %v1254_v49, %s4137_s15  ;;  %v1256_v50 = vpop.f32.mrb[5].mxu1 }
 0x2bd   : > { %1263 = vrot.lane.b32.xlu0 %v1256_v50, %s4137_s15  ;;  %v1258_v51 = vpop.f32.mrb[6].mxu1 }
 0x2be   : > { %v1259_v54 = vpop.f32.mrb[7].mxu1 }
 0x2c3   : > { %v1310_v55 = vpop.f32.mrb[8].mxu1 }
 0x2c4   : > { %1317 = vrot.lane.b32.xlu1 %v1310_v55, %s4138_s22  ;;  %v1312_v56 = vpop.f32.mrb[9].mxu1 }
 0x2c5   : > { %1319 = vrot.lane.b32.xlu0 %v1312_v56, %s4138_s22  ;;  %v1314_v57 = vpop.f32.mrb[10].mxu1 }
 0x2c6   : > { %v1315_v59 = vpop.f32.mrb[11].mxu1 }
 0x2cb   : > { %v1366_v60 = vpop.f32.mrb[12].mxu1 }
 0x2cc   : > { %1373 = vrot.lane.b32.xlu1 %v1366_v60, %s4139_s25  ;;  %v1368_v62 = vpop.f32.mrb[13].mxu1 }
 0x2cd   : > { %1375 = vrot.lane.b32.xlu0 %v1368_v62, %s4139_s25  ;;  %v1370_v63 = vpop.f32.mrb[14].mxu1 }
 0x2ce   : > { %v1371_v3 = vpop.f32.mrb[15].mxu1 }
 0x2d3   : > { %v3696_v5 = vpop.f32.mrb[16].mxu1 }
 0x2d4   : > { %v3698_v10 = vpop.f32.mrb[17].mxu1 }
 0x2d5   : > { %v1426_v11 = vpop.f32.mrb[18].mxu1 }
 0x2d6   : > { %v1427_v12 = vpop.f32.mrb[19].mxu1 }
 0x2db   : > { %v1470_v15 = vpop.f32.mrb[20].mxu1 }
 0x2dc   : > { %1477 = vrot.lane.b32.xlu1 %v1470_v15, %s4140_s12  ;;  %v1472_v16 = vpop.f32.mrb[21].mxu1 }
 0x2dd   : > { %1479 = vrot.lane.b32.xlu0 %v1472_v16, %s4140_s12  ;;  %v1474_v17 = vpop.f32.mrb[22].mxu1 }
 0x2de   : > { %v1475_v18 = vpop.f32.mrb[23].mxu1 }
 0x2e3   : > { %v1526_v23 = vpop.f32.mrb[24].mxu1 }
 0x2e4   : > { %1533 = vrot.lane.b32.xlu1 %v1526_v23, %s4141_s13  ;;  %v1528_v26 = vpop.f32.mrb[25].mxu1 }
 0x2e5   : > { %1535 = vrot.lane.b32.xlu0 %v1528_v26, %s4141_s13  ;;  %v1530_v27 = vpop.f32.mrb[26].mxu1 }
 0x2e6   : > { %v1531_v28 = vpop.f32.mrb[27].mxu1 }
 0x2eb   : > { %v1582_v29 = vpop.f32.mrb[28].mxu1 }
 0x2ec   : > { %1589 = vrot.lane.b32.xlu1 %v1582_v29, %s4142_s14  ;;  %v1584_v30 = vpop.f32.mrb[29].mxu1 }
 0x2ed   : > { %1591 = vrot.lane.b32.xlu0 %v1584_v30, %s4142_s14  ;;  %v1586_v31 = vpop.f32.mrb[30].mxu1 }
 0x2ee   : > { %v1587_v4 = vpop.f32.mrb[31].mxu1 }
 0x2f3   : > { %v1638_v33 = vpop.f32.mrb[32].mxu1 }
 0x2f4   : > { %1645 = vrot.lane.b32.xlu0 %v1638_v33, %s4143_s30  ;;  %v1640_v34 = vpop.f32.mrb[33].mxu1 }
 0x2f5   : > { %1647 = vrot.lane.b32.xlu1 %v1640_v34, %s4143_s30  ;;  %v1642_v35 = vpop.f32.mrb[34].mxu1 }
 0x2f6   : > { %v1643_v36 = vpop.f32.mrb[35].mxu1 }
 0x326   : > { %v1208_v7 = vpop.permute.xlu1 %1207 }
 0x327   : > { %v1210_v39 = vpop.permute.xlu0 %1209 }
 0x328   : > { %v1211_v48 = vsel %vm422_vm1, %v1208_v7, %v1210_v39  ;;  %v1212_v49 = vsel %vm422_vm1, %v1210_v39, %v1208_v7 }
 0x329   : > { %v1213_v62 = vmul.f32 %v1212_v49, %v3477_v20  ;;  %v1214_v63 = vmul.f32 %v1211_v48, %v3480_v21 }
 0x32e   : > { %v1262_v40 = vpop.permute.xlu1 %1261 }
 0x32f   : > { %v1264_v41 = vpop.permute.xlu0 %1263 }
 0x330   : > { %v1265_v46 = vsel %vm444_vm0, %v1262_v40, %v1264_v41  ;;  %v1266_v47 = vsel %vm444_vm0, %v1264_v41, %v1262_v40 }
 0x331   : > { %v1267_v54 = vmul.f32 %v1266_v47, %v3474_v19  ;;  %v1268_v55 = vmul.f32 %v1265_v46, %v3483_v22 }
 0x333   : > { %v1269_v12 = vadd.f32 %v1267_v54, %v1213_v62  ;;  %v1270_v15 = vadd.f32 %v1268_v55, %v1214_v63 }
 0x336   : > { %v1318_v6 = vpop.permute.xlu1 %1317 }
 0x337   : > { %v1320_v42 = vpop.permute.xlu0 %1319 }
 0x338   : > { %v1321_v50 = vsel %vm582_vm2, %v1318_v6, %v1320_v42  ;;  %v1322_v51 = vsel %vm582_vm2, %v1320_v42, %v1318_v6 }
 0x339   : > { %v1323_v3 = vmul.f32 %v1322_v51, %v3512_v45  ;;  %v1324_v11 = vmul.f32 %v1321_v50, %v3487_v25 }
 0x33b   : > { %v1325_v26 = vadd.f32 %v1323_v3, %v1269_v12  ;;  %v1326_v27 = vadd.f32 %v1324_v11, %v1270_v15  ;;  %v412_v15 = vld [vmem:[%s404_s3] sm:$0xff] }
 0x33e   : > { %v1374_v43 = vpop.permute.xlu1 %1373 }
 0x33f   : > { %v1376_v44 = vpop.permute.xlu0 %1375 }
 0x340   : > { %v1377_v59 = vsel %vm665_vm5, %v1374_v43, %v1376_v44  ;;  %v1378_v60 = vsel %vm665_vm5, %v1376_v44, %v1374_v43 }
 0x341   : > { %v1379_v16 = vmul.f32 %v1378_v60, %v3533_v58  ;;  %v1380_v17 = vmul.f32 %v1377_v59, %v3523_v52 }
 0x343   : > { %v1381_v30 = vadd.f32 %v1379_v16, %v1325_v26  ;;  %v1382_v31 = vadd.f32 %v1380_v17, %v1326_v27  ;;  %v413_v16 = vld [vmem:[%s404_s3 + $0x8] sm:$0xff] }
 0x345   : > { %v1429_v41 = vadd.f32 %v3696_v5, %v1381_v30  ;;  %v1430_v6 = vadd.f32 %v3698_v10, %v1382_v31 }
 0x34e   : > { %v1478_v56 = vpop.permute.xlu1 %1477 }
 0x34f   : > { %v1480_v57 = vpop.permute.xlu0 %1479 }
 0x350   : > { %v1481_v28 = vsel %vm814_vm6, %v1478_v56, %v1480_v57  ;;  %v1482_v29 = vsel %vm814_vm6, %v1480_v57, %v1478_v56 }
 0x351   : > { %v1483_v36 = vmul.f32 %v1481_v28, %v3565_v24  ;;  %v1484_v7 = vmul.f32 %v1482_v29, %v3553_v14 }
 0x353   : > { %v1485_v44 = vadd.f32 %v1483_v36, %v1429_v41  ;;  %v1486_v46 = vadd.f32 %v1484_v7, %v1430_v6 }
 0x356   : > { %v1534_v18 = vpop.permute.xlu1 %1533 }
 0x357   : > { %v1536_v23 = vpop.permute.xlu0 %1535 }
 0x358   : > { %v1537_v34 = vsel %vm897_vm7, %v1534_v18, %v1536_v23  ;;  %v1538_v35 = vsel %vm897_vm7, %v1536_v23, %v1534_v18 }
 0x359   : > { %v1539_v42 = vmul.f32 %v1537_v34, %v3586_v37  ;;  %v1540_v43 = vmul.f32 %v1538_v35, %v3576_v32 }
 0x35b   : > { %v1541_v50 = vadd.f32 %v1539_v42, %v1485_v44  ;;  %v1542_v51 = vadd.f32 %v1540_v43, %v1486_v46  ;;  %v3195_v42 = vld [vmem:[%s4106_s7 + $0x8] sm:$0xff]  }
 0x35e   : > { %v1590_v4 = vpop.permute.xlu1 %1589 }
 0x35f   : > { %v1592_v33 = vpop.permute.xlu0 %1591 }
 0x360   : > { %v1593_v39 = vsel %vm980_vm8, %v1590_v4, %v1592_v33  ;;  %v1594_v40 = vsel %vm980_vm8, %v1592_v33, %v1590_v4 }
 0x361   : > { %v1595_v47 = vmul.f32 %v1593_v39, %v3452_v8  ;;  %v1596_v48 = vmul.f32 %v1594_v40, %v3455_v9 }
 0x363   : > { %v1597_v55 = vadd.f32 %v1595_v47, %v1541_v50  ;;  %v1598_v56 = vadd.f32 %v1596_v48, %v1542_v51 }
 0x366   : > { %v1646_v49 = vpop.permute.xlu0 %1645 }
 0x367   : > { %v1648_v54 = vpop.permute.xlu1 %1647 }
 0x368   : > { %v1649_v5 = vsel %vm1063_vm9, %v1646_v49, %v1648_v54  ;;  %v1650_v10 = vsel %vm1063_vm9, %v1648_v54, %v1646_v49 }
 0x369   : > { %v1651_v57 = vmul.f32 %v3624_v61, %v1649_v5  ;;  %v1652_v59 = vmul.f32 %v3612_v53, %v1650_v10 }
 0x36b   : > { %v1653_v60 = vadd.f32 %v1651_v57, %v1597_v55  ;;  %v1654_v62 = vadd.f32 %v1652_v59, %v1598_v56 }
 0x36d   : > { %v1661_v63 = vadd.f32 %v3708_v38, %v1653_v60  ;;  %v1662_v3 = vadd.f32 %v3708_v38, %v1654_v62  ;;  %v2833_v38 = vld [vmem:[%s4109_s10] sm:$0xff] }
 0x36e   : > { %v3196_v60 = vld [vmem:[%s4106_s7] sm:$0xff]  }
 0x36f   : > { %v1663_v11 = vadd.f32 %v1661_v63, %v3398_v0  ;;  %v1664_v12 = vadd.f32 %v1662_v3, %v3405_v2  ;;  %v2319_v0 = vld [vmem:[%s4107_s8 + $0x8] sm:$0xff]  ;;  %v2318_v2 = vld [vmem:[%s4107_s8] sm:$0xff] }
 0x371   : > { %v1665_v17 = vmax.f32 %v1663_v11, 0.0  ;;  %v1666_v18 = vmax.f32 %v1664_v12, 0.0 }
 0x373   : > { %v3769_v23 = vadd.f32 %v1665_v17, %v412_v15  ;;  %v3771_v26 = vadd.f32 %v1666_v18, %v413_v16  ;;  %v3197_v15 = vld [vmem:[%s4106_s7 + $0x10] sm:$0xff]  }
 0x375   : > { %1686 = vrot.lane.b32.xlu1 %v3771_v26, %s4137_s15  ;;  %1684 = vrot.lane.b32.xlu0 %v3769_v23, %s4137_s15  ;;  %v1960_v17 = vpack.c.bf16 %v3771_v26, %v3771_v26 }
 0x379   : > { %1673 = vrot.lane.b32.xlu1 %v3771_v26, %s4146_s0  ;;  %1671 = vrot.lane.b32.xlu0 %v3769_v23, %s4146_s0 }
 0x37d   : > { %1813 = vrot.lane.b32.xlu1 %v3771_v26, %s4138_s22  ;;  %1811 = vrot.lane.b32.xlu0 %v3769_v23, %s4138_s22 }
 0x381   : > { %1887 = vrot.lane.b32.xlu1 %v3771_v26, %s4139_s25  ;;  %1885 = vrot.lane.b32.xlu0 %v3769_v23, %s4139_s25 }
 0x385   : > { %2027 = vrot.lane.b32.xlu1 %v3771_v26, %s4140_s12  ;;  %2025 = vrot.lane.b32.xlu0 %v3769_v23, %s4140_s12 }
 0x389   : > { %2101 = vrot.lane.b32.xlu1 %v3771_v26, %s4141_s13  ;;  %2099 = vrot.lane.b32.xlu0 %v3769_v23, %s4141_s13 }
 0x38d   : > { %2175 = vrot.lane.b32.xlu1 %v3771_v26, %s4142_s14  ;;  %2173 = vrot.lane.b32.xlu0 %v3769_v23, %s4142_s14 }
 0x391   : > { %2249 = vrot.lane.b32.xlu1 %v3771_v26, %s4143_s30  ;;  %2247 = vrot.lane.b32.xlu0 %v3769_v23, %s4143_s30 }
 0x395   : > { %2327 = vperm.xlu1 %3185, %v2319_v0   ;;  %2322 = vperm.xlu0 %3184, %v2318_v2  }
 0x399   : > { %2836 = vperm.xlu0 %3184, %v2833_v38  }
 0x3e7   : > { %v1687_v27 = vpop.permute.xlu1 %1686  ;;  %v1685_v28 = vpop.permute.xlu0 %1684 }
 0x3e8   : > { %v1688_v29 = vsel %vm444_vm0, %v1685_v28, %v1687_v27  ;;  %v1689_v30 = vsel %vm444_vm0, %v1687_v27, %v1685_v28  ;;  %v3198_v27 = vld [vmem:[%s4106_s7 + $0x18] sm:$0xff]   ;;  %v1959_v28 = vpack.c.bf16 %v3769_v23, %v3769_v23 }
 0x3e9   : > { %v1690_v31 = vmul.f32 %v1689_v30, %v3474_v19  ;;  %v1691_v4 = vmul.f32 %v1688_v29, %v3483_v22 }
 0x3ea   : > { %v1970_v30 = vsel %vm468_vm3, %v1959_v28, 0 }
 0x3eb   : > { %v1692_v33 = vpack.c.bf16 %v1690_v31, %v1690_v31  ;;  %v1693_v34 = vpack.c.bf16 %v1691_v4, %v1691_v4  ;;  %v1674_v35 = vpop.permute.xlu1 %1673  ;;  %v1672_v36 = vpop.permute.xlu0 %1671 }
 0x3ec   : > { %v1675_v7 = vsel %vm422_vm1, %v1672_v36, %v1674_v35  ;;  %v1676_v39 = vsel %vm422_vm1, %v1674_v35, %v1672_v36 }
 0x3ed   : > { %v1677_v40 = vmul.f32 %v1676_v39, %v3477_v20  ;;  %v1678_v41 = vmul.f32 %v1675_v7, %v3480_v21  ;;  %3007 = vmatprep.subr.msk.bf16.mxu0 %vm468_vm3, %v1693_v34  ;;  %v1703_v6 = vsel %vm468_vm3, %v1692_v33, 0  ;;  %v3199_v39 = vld [vmem:[%s4106_s7 + $0x20] sm:$0xff]  }
 0x3ee   : > { %1709 = vmatpush1.bf16.msra.mxu0 %v1703_v6 }
 0x3ef   : > { %v1679_v43 = vpack.c.bf16 %v1677_v40, %v1677_v40  ;;  %v1680_v44 = vpack.c.bf16 %v1678_v41, %v1678_v41  ;;  %v1814_v46 = vpop.permute.xlu1 %1813  ;;  %v1812_v47 = vpop.permute.xlu0 %1811 }
 0x3f0   : > { %v1815_v48 = vsel %vm582_vm2, %v1812_v47, %v1814_v46  ;;  %v1816_v51 = vsel %vm582_vm2, %v1814_v46, %v1812_v47 }
 0x3f1   : > { %v1818_v49 = vmul.f32 %v1815_v48, %v3487_v25  ;;  %3008 = vmatmul.mubr.msk.bf16.vlgmr.msra.gmra.mrb[4].mxu0 %vm464_vm4, %v3195_v42  ;;  %3010 = vmatprep.subr.msk.bf16.mxu0 %vm468_vm3, %v1680_v44  ;;  %v1760_v50 = vsel %vm468_vm3, %v1679_v43, 0  ;;  %v1817_v55 = vmul.f32 %v1816_v51, %v3512_v45 }
 0x3f2   : > { %1766 = vmatpush1.bf16.msra.mxu0 %v1760_v50  ;;  %1797 = vmatprep.mubr.bf16.mxu0 %v3270_v1 }
 0x3f3   : > { %v1820_v54 = vpack.c.bf16 %v1818_v49, %v1818_v49  ;;  %v1888_v5 = vpop.permute.xlu1 %1887  ;;  %v1886_v10 = vpop.permute.xlu0 %1885  ;;  %v1819_v57 = vpack.c.bf16 %v1817_v55, %v1817_v55  ;;  %v3200_v49 = vld [vmem:[%s4106_s7 + $0x28] sm:$0xff]  }
 0x3f4   : > { %v1889_v56 = vsel %vm665_vm5, %v1886_v10, %v1888_v5  ;;  %v1890_v3 = vsel %vm665_vm5, %v1888_v5, %v1886_v10 }
 0x3f5   : > { %3015 = vmatprep.subr.msk.bf16.mxu0 %vm468_vm3, %v1820_v54  ;;  %v1892_v59 = vmul.f32 %v1889_v56, %v3523_v52  ;;  %v1830_v63 = vsel %vm468_vm3, %v1819_v57, 0  ;;  %v1891_v11 = vmul.f32 %v1890_v3, %v3533_v58 }
 0x3f7   : > { %v1894_v62 = vpack.c.bf16 %v1892_v59, %v1892_v59  ;;  %v1893_v12 = vpack.c.bf16 %v1891_v11, %v1891_v11  ;;  %v2028_v18 = vpop.permute.xlu1 %2027  ;;  %v2026_v0 = vpop.permute.xlu0 %2025 }
 0x3f8   : > { %v2030_v2 = vsel %vm814_vm6, %v2028_v18, %v2026_v0  ;;  %v2029_v31 = vsel %vm814_vm6, %v2026_v0, %v2028_v18 }
 0x3f9   : > { %v1904_v16 = vsel %vm468_vm3, %v1893_v12, 0  ;;  %v2032_v38 = vmul.f32 %v2030_v2, %v3553_v14  ;;  %v2031_v34 = vmul.f32 %v2029_v31, %v3565_v24  ;;  %v3202_v12 = vld [vmem:[%s4106_s7 + $0x38] sm:$0xff]  }
 0x3fb   : > { %v2034_v29 = vpack.c.bf16 %v2032_v38, %v2032_v38  ;;  %v2102_v4 = vpop.permute.xlu1 %2101  ;;  %v2100_v33 = vpop.permute.xlu0 %2099  ;;  %v2033_v36 = vpack.c.bf16 %v2031_v34, %v2031_v34 }
 0x3fc   : > { %v2104_v35 = vsel %vm897_vm7, %v2102_v4, %v2100_v33  ;;  %v2103_v6 = vsel %vm897_vm7, %v2100_v33, %v2102_v4 }
 0x3fd   : > { %3011 = vmatmul.mubr.msk.bf16.vlgmr.msra.gmra.mrb[4].mxu0 %vm464_vm4, %v3196_v60  ;;  %v2106_v7 = vmul.f32 %v2104_v35, %v3576_v32  ;;  %v2044_v41 = vsel %vm468_vm3, %v2033_v36, 0  ;;  %v2105_v44 = vmul.f32 %v2103_v6, %v3586_v37  ;;  %v3201_v60 = vld [vmem:[%s4106_s7 + $0x30] sm:$0xff]  }
 0x3fe   : > { %1836 = vmatpush1.bf16.msra.mxu0 %v1830_v63  ;;  %1867 = vmatprep.mubr.bf16.mxu0 %v3270_v1  ;;  %v3054_v6 = vld [vmem:[%s4108_s9 + $0x10] sm:$0xf] }
 0x3ff   : > { %3020 = vmatprep.subr.msk.bf16.mxu0 %vm468_vm3, %v1894_v62  ;;  %v2108_v40 = vpack.c.bf16 %v2106_v7, %v2106_v7  ;;  %v2176_v42 = vpop.permute.xlu1 %2175  ;;  %v2174_v43 = vpop.permute.xlu0 %2173  ;;  %v2107_v47 = vpack.c.bf16 %v2105_v44, %v2105_v44  ;;  %v2340_v7 = vld [vmem:[%s4108_s9] sm:$0xf]  ;;  %v3060_v44 = vld [vmem:[%s4108_s9 + $0x1c] sm:$0xf] }
 0x400   : > { %v2178_v46 = vsel %vm980_vm8, %v2176_v42, %v2174_v43  ;;  %v2177_v54 = vsel %vm980_vm8, %v2174_v43, %v2176_v42  ;;  %v3056_v42 = vld [vmem:[%s4108_s9 + $0x14] sm:$0xf]  ;;  %v3058_v43 = vld [vmem:[%s4108_s9 + $0x18] sm:$0xf] }
 0x401   : > { %v2180_v48 = vmul.f32 %v2178_v46, %v3455_v9  ;;  %v2118_v51 = vsel %vm468_vm3, %v2107_v47, 0  ;;  %v2179_v55 = vmul.f32 %v2177_v54, %v3452_v8  ;;  %v3062_v46 = vld [vmem:[%s4108_s9 + $0x20] sm:$0xf] }
 0x403   : > { %v2182_v50 = vpack.c.bf16 %v2180_v48, %v2180_v48  ;;  %v2250_v5 = vpop.permute.xlu1 %2249  ;;  %v2248_v10 = vpop.permute.xlu0 %2247  ;;  %v2181_v57 = vpack.c.bf16 %v2179_v55, %v2179_v55 }
 0x404   : > { %v2252_v56 = vsel %vm1063_vm9, %v2250_v5, %v2248_v10  ;;  %v2251_v3 = vsel %vm1063_vm9, %v2248_v10, %v2250_v5 }
 0x405   : > { %v2254_v59 = vmul.f32 %v3612_v53, %v2252_v56  ;;  %v2192_v63 = vsel %vm468_vm3, %v2181_v57, 0  ;;  %v2253_v11 = vmul.f32 %v3624_v61, %v2251_v3 }
 0x407   : > { %v2256_v62 = vpack.c.bf16 %v2254_v59, %v2254_v59  ;;  %v2255_v53 = vpack.c.bf16 %v2253_v11, %v2253_v11 }
 0x409   : > { %3016 = vmatmul.mubr.msk.bf16.vlgmr.msra.gmra.mrb[4].mxu0 %vm464_vm4, %v3197_v15  ;;  %v2266_v15 = vsel %vm468_vm3, %v2255_v53, 0 }
 0x40a   : > { %1910 = vmatpush1.bf16.msra.mxu0 %v1904_v16  ;;  %1941 = vmatprep.mubr.bf16.mxu0 %v3270_v1  ;;  %v3203_v16 = vld [vmem:[%s4106_s7 + $0x40] sm:$0xff]  }
 0x40b   : > { %3025 = vmatprep.subr.msk.bf16.mxu0 %vm468_vm3, %v1960_v17 }
 0x414   : > { %v2323_v17 = vpop.permute.xlu0 %2322  ;;  %v2328_v2 = vpop.permute.xlu1 %2327 }
 0x415   : > { %3021 = vmatmul.mubr.msk.bf16.vlgmr.msra.gmra.mrb[4].mxu0 %vm464_vm4, %v3198_v27 }
 0x416   : > { %1976 = vmatpush1.bf16.msra.mxu0 %v1970_v30  ;;  %2007 = vmatprep.mubr.bf16.mxu0 %v3270_v1 }
 0x417   : > { %3030 = vmatprep.subr.msk.bf16.mxu0 %vm468_vm3, %v2034_v29 }
 0x421   : > { %3026 = vmatmul.mubr.msk.bf16.vlgmr.msra.gmra.mrb[4].mxu0 %vm464_vm4, %v3199_v39  ;;  %v3048_v39 = vld [vmem:[%s4108_s9 + $0x4] sm:$0xf] }
 0x422   : > { %2050 = vmatpush1.bf16.msra.mxu0 %v2044_v41  ;;  %2081 = vmatprep.mubr.bf16.mxu0 %v3270_v1  ;;  %v3052_v41 = vld [vmem:[%s4108_s9 + $0xc] sm:$0xf] }
 0x423   : > { %3035 = vmatprep.subr.msk.bf16.mxu0 %vm468_vm3, %v2108_v40  ;;  %v3050_v40 = vld [vmem:[%s4108_s9 + $0x8] sm:$0xf] }
 0x42d   : > { %3031 = vmatmul.mubr.msk.bf16.vlgmr.msra.gmra.mrb[4].mxu0 %vm464_vm4, %v3200_v49 }
 0x42e   : > { %2124 = vmatpush1.bf16.msra.mxu0 %v2118_v51  ;;  %2155 = vmatprep.mubr.bf16.mxu0 %v3270_v1 }
 0x42f   : > { %3040 = vmatprep.subr.msk.bf16.mxu0 %vm468_vm3, %v2182_v50 }
 0x439   : > { %3036 = vmatmul.mubr.msk.bf16.vlgmr.msra.gmra.mrb[4].mxu0 %vm464_vm4, %v3201_v60 }
 0x43a   : > { %2198 = vmatpush1.bf16.msra.mxu0 %v2192_v63  ;;  %2229 = vmatprep.mubr.bf16.mxu0 %v3270_v1 }
 0x43b   : > { %3045 = vmatprep.subr.msk.bf16.mxu0 %vm468_vm3, %v2256_v62 }
 0x445   : > { %3041 = vmatmul.mubr.msk.bf16.vlgmr.msra.gmra.mrb[4].mxu0 %vm464_vm4, %v3202_v12 }
 0x446   : > { %2272 = vmatpush1.bf16.msra.mxu0 %v2266_v15  ;;  %2303 = vmatprep.mubr.bf16.mxu0 %v3270_v1 }
 0x451   : > { %3046 = vmatmul.mubr.msk.bf16.vlgmr.msra.gmra.mrb[4].mxu0 %vm464_vm4, %v3203_v16 }
 0x524   : > { %v2305_v61 = vpop.f32.mrb[4].mxu0 }
 0x525   : > { %v2330_v18 = vadd.f32 %v2323_v17, %v2305_v61  ;;  %v2307_v0 = vpop.f32.mrb[5].mxu0 }
 0x526   : > { %v2331_v38 = vadd.f32 %v2323_v17, %v2307_v0  ;;  %v2309_v27 = vpop.f32.mrb[6].mxu0 }
 0x527   : > { %v2332_v28 = vadd.f32 %v2328_v2, %v2309_v27  ;;  %v2311_v29 = vpop.f32.mrb[7].mxu0  ;;  %v2334_v31 = vmax.f32 %v2330_v18, 0.0 }
 0x528   : > { %v2333_v30 = vadd.f32 %v2328_v2, %v2311_v29  ;;  %v2335_v33 = vmax.f32 %v2331_v38, 0.0 }
 0x529   : > { %v2336_v4 = vmax.f32 %v2332_v28, 0.0 }
 0x52a   : > { %v2337_v34 = vmax.f32 %v2333_v30, 0.0 }
 0x52b   : > { %v2338_v35 = vpack.c.bf16 %v2336_v4, %v2334_v31 }
 0x52c   : > { %v2339_v36 = vpack.c.bf16 %v2337_v34, %v2335_v33 }
 0x52e   : > { %2344 = vmatprep.subr.bf16.mxu1 %v2339_v36 }
 0x52f   : > { %2345 = vmatpush1.bf16.msra.mxu1 %v2338_v35 }
 0x530   : > { %2398 = vmatprep.subr.bf16.mxu1 %v2339_v36 }
 0x532   : > { %3047 = vmatmul.mubr.msk.bf16.vlgmr.msra.gmra.mrb[36].mxu1 %vm1162_vm10, %v2340_v7 }
 0x533   : > { %2399 = vmatpush1.bf16.msra.mxu1 %v2338_v35  ;;  %2430 = vmatprep.mubr.bf16.mxu1 %v3270_v1 }
 0x534   : > { %2454 = vmatprep.subr.bf16.mxu1 %v2339_v36 }
 0x53a   : > { %3049 = vmatmul.mubr.msk.bf16.vlgmr.msra.gmra.mrb[40].mxu1 %vm1162_vm10, %v3048_v39 }
 0x53b   : > { %2455 = vmatpush1.bf16.msra.mxu1 %v2338_v35  ;;  %2486 = vmatprep.mubr.bf16.mxu1 %v3270_v1 }
 0x53c   : > { %2510 = vmatprep.subr.bf16.mxu1 %v2339_v36 }
 0x542   : > { %3051 = vmatmul.mubr.msk.bf16.vlgmr.msra.gmra.mrb[44].mxu1 %vm1162_vm10, %v3050_v40 }
 0x543   : > { %2511 = vmatpush1.bf16.msra.mxu1 %v2338_v35  ;;  %2542 = vmatprep.mubr.bf16.mxu1 %v3270_v1 }
 0x544   : > { %2566 = vmatprep.subr.bf16.mxu1 %v2339_v36 }
 0x54a   : > { %3053 = vmatmul.mubr.msk.bf16.vlgmr.msra.gmra.mrb[48].mxu1 %vm1162_vm10, %v3052_v41 }
 0x54b   : > { %2567 = vmatpush1.bf16.msra.mxu1 %v2338_v35  ;;  %2598 = vmatprep.mubr.bf16.mxu1 %v3270_v1 }
 0x54c   : > { %2614 = vmatprep.subr.bf16.mxu1 %v2339_v36 }
 0x552   : > { %3055 = vmatmul.mubr.msk.bf16.vlgmr.msra.gmra.mrb[52].mxu1 %vm1162_vm10, %v3054_v6 }
 0x553   : > { %2615 = vmatpush1.bf16.msra.mxu1 %v2338_v35  ;;  %2646 = vmatprep.mubr.bf16.mxu1 %v3270_v1 }
 0x554   : > { %2670 = vmatprep.subr.bf16.mxu1 %v2339_v36 }
 0x55a   : > { %3057 = vmatmul.mubr.msk.bf16.vlgmr.msra.gmra.mrb[56].mxu1 %vm1162_vm10, %v3056_v42 }
 0x55b   : > { %2671 = vmatpush1.bf16.msra.mxu1 %v2338_v35  ;;  %2702 = vmatprep.mubr.bf16.mxu1 %v3270_v1 }
 0x55c   : > { %2726 = vmatprep.subr.bf16.mxu1 %v2339_v36 }
 0x562   : > { %3059 = vmatmul.mubr.msk.bf16.vlgmr.msra.gmra.mrb[60].mxu1 %vm1162_vm10, %v3058_v43 }
 0x563   : > { %2727 = vmatpush1.bf16.msra.mxu1 %v2338_v35  ;;  %2758 = vmatprep.mubr.bf16.mxu1 %v3270_v1 }
 0x564   : > { %2782 = vmatprep.subr.bf16.mxu1 %v2339_v36 }
 0x56a   : > { %3061 = vmatmul.mubr.msk.bf16.vlgmr.msra.gmra.mrb[64].mxu1 %vm1162_vm10, %v3060_v44 }
 0x56b   : > { %2783 = vmatpush1.bf16.msra.mxu1 %v2338_v35  ;;  %2814 = vmatprep.mubr.bf16.mxu1 %v3270_v1  ;;  %v3992_v35 = vpop.permute.xlu0 %2836 }
 0x572   : > { %3063 = vmatmul.mubr.msk.bf16.vlgmr.msra.gmra.mrb[68].mxu1 %vm1162_vm10, %v3062_v46 }
 0x605   : > { %v2378_v47 = vpop.f32.mrb[36].mxu1 }
 0x606   : > { %v2380_v48 = vpop.f32.mrb[37].mxu1  ;;  %2385 = vrot.lane.b32.xlu0 %v2378_v47, %s4146_s0 }
 0x607   : > { %v2382_v49 = vpop.f32.mrb[38].mxu1  ;;  %2387 = vrot.lane.b32.xlu1 %v2380_v48, %s4146_s0 }
 0x608   : > { %v2383_v50 = vpop.f32.mrb[39].mxu1 }
 0x60d   : > { %v2432_v51 = vpop.f32.mrb[40].mxu1 }
 0x60e   : > { %v2434_v54 = vpop.f32.mrb[41].mxu1  ;;  %2439 = vrot.lane.b32.xlu0 %v2432_v51, %s4137_s15 }
 0x60f   : > { %2441 = vrot.lane.b32.xlu1 %v2434_v54, %s4137_s15  ;;  %v2436_v1 = vpop.f32.mrb[42].mxu1  ;;  %s392_s15 = sand.u32 1, %s3260_s18  }
 0x610   : > { %v2437_v5 = vpop.f32.mrb[43].mxu1 }
 0x615   : > { %v2488_v10 = vpop.f32.mrb[44].mxu1 }
 0x616   : > { %v2490_v55 = vpop.f32.mrb[45].mxu1  ;;  %2495 = vrot.lane.b32.xlu0 %v2488_v10, %s4138_s22 }
 0x617   : > { %2497 = vrot.lane.b32.xlu1 %v2490_v55, %s4138_s22  ;;  %v2492_v56 = vpop.f32.mrb[46].mxu1  ;;  %s2937_s22 = sshll.u32 %s392_s15, 4 }
 0x618   : > { %v2493_v57 = vpop.f32.mrb[47].mxu1  ;;  %s394_s0 = scalar_lea.vmem [#allocation2], %s2937_s22  ;;  %s3210_s22 = sshll.u32 %s3279_s24, 4  ;;  %s3211_s22 = int_to_ptr.vmem [resolvable:$false] %s3210_s22 }
 0x619   : > { %s2862_s1 = sshll.u32 %s394_s0, 4  ;;  %s4059_s1 = int_to_ptr.vmem [resolvable:$true] %s2862_s1 }
 0x61a   : > { %s3206_s16 = scalar_lea.vmem %s4059_s1, 256  ;;  %p3213_p0 = scmp.lt.s32.totalorder %s4059_s1, %s3211_s22 }
 0x61b   : > { %p3207_p11 = scmp.ne.s32.totalorder %s4059_s1, %s3206_s16 }
 0x61d   : > { %v2544_v59 = vpop.f32.mrb[48].mxu1  ;;  %p3208_p12 = pnand %p3207_p11, %p3378_p5 }
 0x61e   : > { %v2546_v60 = vpop.f32.mrb[49].mxu1  ;;  %2551 = vrot.lane.b32.xlu0 %v2544_v59, %s4139_s25 }
 0x61f   : > { %2553 = vrot.lane.b32.xlu1 %v2546_v60, %s4139_s25  ;;  %v2548_v62 = vpop.f32.mrb[50].mxu1  ;;  %p3209_p13 = pneg %p3208_p12  ;;  %s3212_s25 = scalar_lea.vmem %s3211_s22, 512 }
 0x620   : > { %v2549_v63 = vpop.f32.mrb[51].mxu1  ;;  %p3214_p1 = scmp.lt.s32.totalorder %s3212_s25, %s3206_s16 }
 0x622   : > { %p3215_p2 = por %p3214_p1, %p3213_p0 }
 0x624   : > { %p3216_p3 = pnand %p3215_p2, %p3209_p13 }
 0x625   : > { %v3980_v3 = vpop.f32.mrb[52].mxu1 }
 0x626   : > { %v3982_v11 = vpop.f32.mrb[53].mxu1 }
 0x627   : > { %v2604_v53 = vpop.f32.mrb[54].mxu1 }
 0x628   : > { %v2605_v12 = vpop.f32.mrb[55].mxu1 }
 0x62d   : > { %v2648_v15 = vpop.f32.mrb[56].mxu1 }
 0x62e   : > { %v2650_v16 = vpop.f32.mrb[57].mxu1  ;;  %2655 = vrot.lane.b32.xlu0 %v2648_v15, %s4140_s12 }
 0x62f   : > { %2657 = vrot.lane.b32.xlu1 %v2650_v16, %s4140_s12  ;;  %v2652_v17 = vpop.f32.mrb[58].mxu1 }
 0x630   : > { %v2653_v61 = vpop.f32.mrb[59].mxu1 }
 0x635   : > { %v2704_v18 = vpop.f32.mrb[60].mxu1 }
 0x636   : > { %v2706_v0 = vpop.f32.mrb[61].mxu1  ;;  %2711 = vrot.lane.b32.xlu0 %v2704_v18, %s4141_s13 }
 0x637   : > { %2713 = vrot.lane.b32.xlu1 %v2706_v0, %s4141_s13  ;;  %v2708_v2 = vpop.f32.mrb[62].mxu1 }
 0x638   : > { %v2709_v38 = vpop.f32.mrb[63].mxu1 }
 0x63d   : > { %v2760_v27 = vpop.f32.mrb[64].mxu1 }
 0x63e   : > { %v2762_v28 = vpop.f32.mrb[65].mxu1  ;;  %2767 = vrot.lane.b32.xlu0 %v2760_v27, %s4142_s14 }
 0x63f   : > { %2769 = vrot.lane.b32.xlu1 %v2762_v28, %s4142_s14  ;;  %v2764_v29 = vpop.f32.mrb[66].mxu1 }
 0x640   : > { %v2765_v30 = vpop.f32.mrb[67].mxu1 }
 0x645   : > { %v2816_v31 = vpop.f32.mrb[68].mxu1 }
 0x646   : > { %v2818_v4 = vpop.f32.mrb[69].mxu1  ;;  %2823 = vrot.lane.b32.xlu1 %v2816_v31, %s4143_s30 }
 0x647   : > { %2825 = vrot.lane.b32.xlu0 %v2818_v4, %s4143_s30  ;;  %v2820_v33 = vpop.f32.mrb[70].mxu1  ;;  %s3071_s30 = sshll.u32 %s3361_s21, 8  ;;  %s2848_s21 = scalar_lea.sflag [#allocation3], %s392_s15 }
 0x648   : > { %v2821_v34 = vpop.f32.mrb[71].mxu1  ;;  %s4057_s29 = scalar_lea.hbm %s4110_s11, %s3071_s30 }
 0x678   : > { %v2386_v36 = vpop.permute.xlu0 %2385 }
 0x679   : > { %v2388_v7 = vpop.permute.xlu1 %2387 }
 0x67a   : > { %v2389_v47 = vsel %vm422_vm1, %v2386_v36, %v2388_v7  ;;  %v2390_v48 = vsel %vm422_vm1, %v2388_v7, %v2386_v36 }
 0x67b   : > { %v2391_v56 = vmul.f32 %v2390_v48, %v3477_v20  ;;  %v2392_v57 = vmul.f32 %v2389_v47, %v3480_v21 }
 0x680   : > { %v2440_v39 = vpop.permute.xlu0 %2439 }
 0x681   : > { %v2442_v40 = vpop.permute.xlu1 %2441 }
 0x682   : > { %v2443_v44 = vsel %vm444_vm0, %v2440_v39, %v2442_v40  ;;  %v2444_v46 = vsel %vm444_vm0, %v2442_v40, %v2440_v39  ;;  %v3205_v39 = vld [vmem:[%s4101_s2 + $0x18] ss:$0 sm:$0xff] }
 0x683   : > { %v2445_v51 = vmul.f32 %v2444_v46, %v3474_v19  ;;  %v2446_v54 = vmul.f32 %v2443_v44, %v3483_v22 }
 0x685   : > { %v2447_v62 = vadd.f32 %v2445_v51, %v2391_v56  ;;  %v2448_v19 = vadd.f32 %v2446_v54, %v2392_v57 }
 0x688   : > { %v2496_v41 = vpop.permute.xlu0 %2495 }
 0x689   : > { %v2498_v6 = vpop.permute.xlu1 %2497 }
 0x68a   : > { %v2499_v49 = vsel %vm582_vm2, %v2496_v41, %v2498_v6  ;;  %v2500_v50 = vsel %vm582_vm2, %v2498_v6, %v2496_v41 }
 0x68b   : > { %v2501_v59 = vmul.f32 %v2500_v50, %v3512_v45  ;;  %v2502_v60 = vmul.f32 %v2499_v49, %v3487_v25 }
 0x68d   : > { %v2503_v15 = vadd.f32 %v2501_v59, %v2447_v62  ;;  %v2504_v16 = vadd.f32 %v2502_v60, %v2448_v19 }
 0x690   : > { %v2552_v42 = vpop.permute.xlu0 %2551 }
 0x691   : > { %v2554_v43 = vpop.permute.xlu1 %2553 }
 0x692   : > { %v2555_v10 = vsel %vm665_vm5, %v2552_v42, %v2554_v43  ;;  %v2556_v55 = vsel %vm665_vm5, %v2554_v43, %v2552_v42 }
 0x693   : > { %v2557_v22 = vmul.f32 %v2556_v55, %v3533_v58  ;;  %v2558_v63 = vmul.f32 %v2555_v10, %v3523_v52 }
 0x695   : > { %v2559_v21 = vadd.f32 %v2557_v22, %v2503_v15  ;;  %v2560_v45 = vadd.f32 %v2558_v63, %v2504_v16 }
 0x697   : > { %v2607_v27 = vadd.f32 %v3980_v3, %v2559_v21  ;;  %v2608_v28 = vadd.f32 %v3982_v11, %v2560_v45 }
 0x6a0   : > { %v2656_v1 = vpop.permute.xlu0 %2655 }
 0x6a1   : > { %v2658_v5 = vpop.permute.xlu1 %2657 }
 0x6a2   : > { %v2659_v17 = vsel %vm814_vm6, %v2656_v1, %v2658_v5  ;;  %v2660_v20 = vsel %vm814_vm6, %v2658_v5, %v2656_v1 }
 0x6a3   : > { %v2661_v18 = vmul.f32 %v2659_v17, %v3565_v24  ;;  %v2662_v0 = vmul.f32 %v2660_v20, %v3553_v14 }
 0x6a5   : > { %v2663_v31 = vadd.f32 %v2661_v18, %v2607_v27  ;;  %v2664_v4 = vadd.f32 %v2662_v0, %v2608_v28 }
 0x6a8   : > { %v2712_v53 = vpop.permute.xlu0 %2711 }
 0x6a9   : > { %v2714_v12 = vpop.permute.xlu1 %2713 }
 0x6aa   : > { %v2715_v58 = vsel %vm897_vm7, %v2712_v53, %v2714_v12  ;;  %v2716_v52 = vsel %vm897_vm7, %v2714_v12, %v2712_v53 }
 0x6ab   : > { %v2717_v29 = vmul.f32 %v2715_v58, %v3586_v37  ;;  %v2718_v30 = vmul.f32 %v2716_v52, %v3576_v32 }
 0x6ad   : > { %v2719_v34 = vadd.f32 %v2717_v29, %v2663_v31  ;;  %v2720_v36 = vadd.f32 %v2718_v30, %v2664_v4 }
 0x6b0   : > { %v2768_v61 = vpop.permute.xlu0 %2767 }
 0x6b1   : > { %v2770_v25 = vpop.permute.xlu1 %2769 }
 0x6b2   : > { %v2771_v2 = vsel %vm980_vm8, %v2768_v61, %v2770_v25  ;;  %v2772_v38 = vsel %vm980_vm8, %v2770_v25, %v2768_v61 }
 0x6b3   : > { %v2773_v24 = vmul.f32 %v2771_v2, %v3452_v8  ;;  %v2774_v14 = vmul.f32 %v2772_v38, %v3455_v9  ;;  %v3204_v8 = vld [vmem:[%s4101_s2 + $0x10] ss:$0 sm:$0xff] }
 0x6b5   : > { %v2775_v32 = vadd.f32 %v2773_v24, %v2719_v34  ;;  %v2776_v11 = vadd.f32 %v2774_v14, %v2720_v36 }
 0x6b8   : > { %v2824_v33 = vpop.permute.xlu1 %2823 }
 0x6b9   : > { %v2826_v7 = vpop.permute.xlu0 %2825 }
 0x6ba   : > { %v2827_v3 = vsel %vm1063_vm9, %v2824_v33, %v2826_v7  ;;  %v2828_v37 = vsel %vm1063_vm9, %v2826_v7, %v2824_v33 }
 0x6bb   : > { %v2829_v9 = vmul.f32 %v3204_v8, %v2827_v3  ;;  %v2830_v40 = vmul.f32 %v3205_v39, %v2828_v37 }
 0x6bd   : > { %v2831_v41 = vadd.f32 %v2829_v9, %v2775_v32  ;;  %v2832_v6 = vadd.f32 %v2830_v40, %v2776_v11 }
 0x6bf   : > { %v2839_v42 = vadd.f32 %v3992_v35, %v2831_v41  ;;  %v2840_v13 = vadd.f32 %v3992_v35, %v2832_v6 }
 0x6c1   : > { %v2841_v43 = vadd.f32 %v2839_v42, %v3769_v23  ;;  %v2842_v44 = vadd.f32 %v2840_v13, %v3771_v26 }
 0x6c3   : > { %v2843_v46 = vmax.f32 %v2841_v43, 0.0  ;;  %v2844_v47 = vmax.f32 %v2842_v44, 0.0 }
 0x6c5   : > { %2845 = vst [vmem:[%s394_s0] sm:$0xff] %v2843_v46  ;;  %2846 = vst [vmem:[%s394_s0 + $0x8] sm:$0xff] %v2844_v47 }
 0x6c6   : > { %3219 = shalt.err (!%p3216_p3)
}
 0x6c7   : > { %s3220_s15 = scalar_lea.hbm %s4057_s29, 256  ;;  %s3224_s14 = scalar_lea.hbm %s4110_s11, 512 }
 0x6c8   : > { %p3221_p4 = scmp.ne.s32.totalorder %s4057_s29, %s3220_s15  ;;  %p3225_p9 = scmp.lt.u32.totalorder %s4057_s29, %s4110_s11 }
 0x6c9   : > { %p3226_p10 = scmp.lt.u32.totalorder %s3224_s14, %s3220_s15  ;;  %p3228_p12 = scmp.lt.u32.totalorder %s3220_s15, %s4057_s29 }
 0x6ca   : > { %p3222_p7 = pnand %p3221_p4, %p3378_p5 }
 0x6cb   : > { %p3227_p11 = por %p3226_p10, %p3225_p9 }
 0x6cc   : > { %p3223_p8 = pneg %p3222_p7 }
 0x6cd   : > { %p3229_p13 = por %p3228_p12, %p3227_p11 }
 0x6cf   : > { %p3230_p0 = pnand %p3229_p13, %p3223_p8 }
 0x6d1   : > { %3233 = shalt.err (!%p3230_p0)
}
 0x6d2   : > { %3136 = dma.vmem_to_hbm [thread:$0]  (%p3378_p5), %s4059_s1, 256, %s4057_s29, %s2848_s21  }
 0x6d3 PF: > { %p3142_p1 = scmp.ge.s32.totalorder %s3268_s20, 2  ;;  %s2874_s4 = sand.u32 1, %s3256_s17  }
 0x6d4   : > { %s2875_s3 = scalar_lea.sflag [#allocation3], %s2874_s4 }
 0x6d5   : > { %p3139_p2 = pnand %p3142_p1, %p3382_p6 }
 0x6d7   : > { %3251 = dma.done.wait (!%p3139_p2), %s2875_s3, 256  }
 0x6d8   : > { %3253 = vsyncadd (!%p3139_p2), %s2875_s3, 4294967040  ;;  %p21_p3 = scmp.ge.s32.totalorder %s3365_s23, 4   ;;  %s4147_s17 = smov %s3260_s18 }
 0x6d9   : > { %s4148_s18 = smov %s3264_s19  ;;  %s4149_s19 = smov %s3376_s26 }
 0x6da   : > { %s4150_s20 = smov %s3365_s23  ;;  %23 = sbr.rel (!%p21_p3) target bundleno = 8 (0x8), region = 134 }
 0x6e1   :  { %2880 = vsyncpa [#allocation3], 1 }
 0x6e2   :  { %2882 = vsyncpa [#allocation3 + $0x1], 1 }

</bundles_post_ra>
